<compile_context>
chip_gen: v7x
topology: tpu7x:2x2x1
jax: 0.10.0
libtpu: 0.0.40
codegen_flags: <defaults>
</compile_context>

<pallas_src>
import functools
import math

import jax
import jax.numpy as jnp
from jax import lax
from jax.experimental import pallas as pl
from jax.experimental.pallas import tpu as pltpu


# ----------------------------------------------------------------------------
# Parameter construction (deterministic, mirrors GaussianSmoothing.__init__).
# The 2-D buffer is an exact outer product of 1-D Gaussians; we return both the
# jointly-normalized 2-D stencil (for the reference conv) and the two 1-D factors
# used by the separable Pallas kernel (wv ⊗ wh == k2d up to float rounding).
# ----------------------------------------------------------------------------
def gaussian_separable_weights(kernel_size, sigma):
    if isinstance(kernel_size, (int, float)):
        kernel_size = [int(kernel_size)] * 2
    if isinstance(sigma, (int, float)):
        sigma = [float(sigma)] * 2
    raw = []
    for size, std in zip(kernel_size, sigma):
        g = jnp.arange(size, dtype=jnp.float32)
        mean = (size - 1) / 2.0
        w = (1.0 / (std * math.sqrt(2.0 * math.pi))) * jnp.exp(
            -(((g - mean) / std) ** 2) / 2.0
        )
        raw.append(w)
    gh, gw = raw
    k2d = gh[:, None] * gw[None, :]
    k2d = k2d / jnp.sum(k2d)                     # joint normalization (PyTorch buffer)
    wv = gh / jnp.sum(gh)                        # separable factors; wv ⊗ wh == k2d
    wh = gw / jnp.sum(gw)
    return wv, wh, k2d


# ----------------------------------------------------------------------------
# Pallas kernel: one lane-block of channels per grid step, separable 2-pass blur.
#   wv_ref: (KH,) f32 SMEM      wh_ref: (KW,) f32 SMEM
#   x_ref : (Hp, Wp, Cb) VMEM   o_ref : (H, W, Cb) VMEM
#   tmp   : (H, Wp, Cb) f32 VMEM scratch
# ----------------------------------------------------------------------------
def _sep_gauss_kernel(wv_ref, wh_ref, x_ref, o_ref, tmp_ref, *, H, W, KH, KW):
    # Vertical pass: each tap is a leading-dim Ref offset (no lane/sublane relayout).
    acc = wv_ref[0] * x_ref[0:H, :, :].astype(jnp.float32)
    for i in range(1, KH):
        acc = acc + wv_ref[i] * x_ref[i:i + H, :, :].astype(jnp.float32)
    tmp_ref[...] = acc

    # Horizontal pass: each tap is a sublane-dim Ref offset (lane dim untouched).
    acc2 = wh_ref[0] * tmp_ref[:, 0:W, :]
    for j in range(1, KW):
        acc2 = acc2 + wh_ref[j] * tmp_ref[:, j:j + W, :]
    o_ref[...] = acc2.astype(o_ref.dtype)


def gaussian_smoothing_2d(x, wv, wh, *, nc_block_target_bytes=4 << 20):
    """Depthwise 2-D Gaussian smoothing, padding='same' (PyTorch semantics).

    x:  (N, C, H, W)
    wv: (KH,) vertical 1-D factor, wh: (KW,) horizontal 1-D factor
        (wv ⊗ wh == the module's jointly-normalized 2-D stencil).
    """
    N, C, H, W = x.shape
    KH, KW = int(wv.shape[0]), int(wh.shape[0])

    # PyTorch padding='same' (stride 1): total pad = k-1, low side gets total//2.
    ph_lo = (KH - 1) // 2
    ph_hi = (KH - 1) - ph_lo
    pw_lo = (KW - 1) // 2
    pw_hi = (KW - 1) - pw_lo
    Hp, Wp = H + KH - 1, W + KW - 1

    # Channels-last lane-dense layout: (Hp, Wp, N*C). Layout plumbing stays in XLA.
    NC = N * C
    xt = jnp.transpose(x, (2, 3, 0, 1)).reshape(H, W, NC)
    xp = jnp.pad(xt, ((ph_lo, ph_hi), (pw_lo, pw_hi), (0, 0)))

    # Lane-block over N*C: full dim when small (legal: equals array dim), else a
    # multiple of 128 sized to keep one padded input block around the target bytes
    # (comfortably inside the default scoped VMEM limit with double-buffering,
    # including v7x's smaller VMEM).
    if NC <= 128:
        nc_blk = NC
        nc_pad = NC
    else:
        lanes_for_budget = max(128, (nc_block_target_bytes // (Hp * Wp * 4)) // 128 * 128)
        nc_round = ((NC + 127) // 128) * 128
        nc_blk = min(512, lanes_for_budget, nc_round)
        nc_pad = ((NC + nc_blk - 1) // nc_blk) * nc_blk
        if nc_pad != NC:
            xp = jnp.pad(xp, ((0, 0), (0, 0), (0, nc_pad - NC)))
    grid = (nc_pad // nc_blk,)

    kernel = functools.partial(_sep_gauss_kernel, H=H, W=W, KH=KH, KW=KW)

    itemsize = jnp.dtype(x.dtype).itemsize
    cost = pl.CostEstimate(
        flops=2 * (KH + KW) * H * W * nc_pad,
        transcendentals=0,
        bytes_accessed=(Hp * Wp + H * W) * nc_pad * itemsize,
    )

    out = pl.pallas_call(
        kernel,
        out_shape=jax.ShapeDtypeStruct((H, W, nc_pad), x.dtype),
        grid_spec=pltpu.PrefetchScalarGridSpec(
            num_scalar_prefetch=0,
            grid=grid,
            in_specs=[
                # 1-D stencil weights: whole arrays in SMEM (cheap scalar reads).
                pl.BlockSpec(memory_space=pltpu.MemorySpace.SMEM),
                pl.BlockSpec(memory_space=pltpu.MemorySpace.SMEM),
                # Padded slab, one lane-block of channels per grid step.
                pl.BlockSpec((Hp, Wp, nc_blk), lambda b: (0, 0, b)),
            ],
            out_specs=pl.BlockSpec((H, W, nc_blk), lambda b: (0, 0, b)),
            scratch_shapes=[pltpu.VMEM((H, Wp, nc_blk), jnp.float32)],
        ),
        compiler_params=pltpu.CompilerParams(
            dimension_semantics=("parallel",),
        ),
        cost_estimate=cost,
    )(wv.astype(jnp.float32), wh.astype(jnp.float32), xp)

    out = out[:, :, :NC].reshape(H, W, N, C)
    return jnp.transpose(out, (2, 3, 0, 1))


# ----------------------------------------------------------------------------
# Reference (plain JAX, matches F.conv2d(groups=C, padding='same') with the
# module's jointly-normalized 2-D Gaussian buffer).
# ----------------------------------------------------------------------------
def _reference(x, weight2d):
    N, C, H, W = x.shape
    KH, KW = weight2d.shape
    w = jnp.broadcast_to(weight2d[None, None], (C, 1, KH, KW))
    ph_lo = (KH - 1) // 2
    pw_lo = (KW - 1) // 2
    return lax.conv_general_dilated(
        x, w,
        window_strides=(1, 1),
        padding=[(ph_lo, KH - 1 - ph_lo), (pw_lo, KW - 1 - pw_lo)],
        dimension_numbers=("NCHW", "OIHW", "NCHW"),
        feature_group_count=C,
    )


if __name__ == "__main__":
    channels, kernel_size, sigma = 4, 5, 1.0
    key = jax.random.PRNGKey(0)
    x = jax.random.normal(key, (2, channels, 16, 16), dtype=jnp.float32)

    wv, wh, k2d = gaussian_separable_weights(kernel_size, sigma)

    out = gaussian_smoothing_2d(x, wv, wh)
    out = jax.block_until_ready(out)

    ref = _reference(x, k2d)
    assert out.shape == x.shape and out.dtype == x.dtype
    assert jnp.allclose(out, ref, atol=1e-5, rtol=1e-5), "mismatch vs reference conv"

    print("KERNEL_OK")
</pallas_src>

<mosaic_0001>
module attributes {stable_mosaic.version = 11 : i64} {
  func.func @_sep_gauss_kernel(%arg0: i32, %arg1: memref<5xf32, #tpu.memory_space<smem>>, %arg2: memref<5xf32, #tpu.memory_space<smem>>, %arg3: memref<20x20x8xf32, #tpu.memory_space<vmem>>, %arg4: memref<16x16x8xf32, #tpu.memory_space<vmem>>, %arg5: memref<16x20x8xf32, #tpu.memory_space<vmem>>) attributes {dimension_semantics = [#tpu.dimension_semantics<parallel>], iteration_bounds = array<i64: 1>, scalar_prefetch = 0 : i64, scratch_operands = 1 : i64, tpu.core_type = #tpu.core_type<tc>, window_params = [{transform_indices = @transform_0, window_bounds = array<i64: 5>}, {transform_indices = @transform_1, window_bounds = array<i64: 5>}, {transform_indices = @transform_2, window_bounds = array<i64: 20, 20, 8>}, {transform_indices = @transform_3, window_bounds = array<i64: 16, 16, 8>}]} {
    %c0 = arith.constant 0 : index
    %0 = memref.load %arg1[%c0] : memref<5xf32, #tpu.memory_space<smem>>
    %c0_0 = arith.constant 0 : index
    %c0_1 = arith.constant 0 : index
    %c0_2 = arith.constant 0 : index
    %1 = vector.load %arg3[%c0_0, %c0_1, %c0_2] : memref<20x20x8xf32, #tpu.memory_space<vmem>>, vector<16x20x8xf32>
    %2 = vector.broadcast %0 : f32 to vector<16x20x8xf32>
    %3 = arith.mulf %2, %1 : vector<16x20x8xf32>
    %c1 = arith.constant 1 : index
    %4 = memref.load %arg1[%c1] : memref<5xf32, #tpu.memory_space<smem>>
    %c1_3 = arith.constant 1 : index
    %c0_4 = arith.constant 0 : index
    %c0_5 = arith.constant 0 : index
    %5 = vector.load %arg3[%c1_3, %c0_4, %c0_5] : memref<20x20x8xf32, #tpu.memory_space<vmem>>, vector<16x20x8xf32>
    %6 = vector.broadcast %4 : f32 to vector<16x20x8xf32>
    %7 = arith.mulf %6, %5 : vector<16x20x8xf32>
    %8 = arith.addf %3, %7 : vector<16x20x8xf32>
    %c2 = arith.constant 2 : index
    %9 = memref.load %arg1[%c2] : memref<5xf32, #tpu.memory_space<smem>>
    %c2_6 = arith.constant 2 : index
    %c0_7 = arith.constant 0 : index
    %c0_8 = arith.constant 0 : index
    %10 = vector.load %arg3[%c2_6, %c0_7, %c0_8] : memref<20x20x8xf32, #tpu.memory_space<vmem>>, vector<16x20x8xf32>
    %11 = vector.broadcast %9 : f32 to vector<16x20x8xf32>
    %12 = arith.mulf %11, %10 : vector<16x20x8xf32>
    %13 = arith.addf %8, %12 : vector<16x20x8xf32>
    %c3 = arith.constant 3 : index
    %14 = memref.load %arg1[%c3] : memref<5xf32, #tpu.memory_space<smem>>
    %c3_9 = arith.constant 3 : index
    %c0_10 = arith.constant 0 : index
    %c0_11 = arith.constant 0 : index
    %15 = vector.load %arg3[%c3_9, %c0_10, %c0_11] : memref<20x20x8xf32, #tpu.memory_space<vmem>>, vector<16x20x8xf32>
    %16 = vector.broadcast %14 : f32 to vector<16x20x8xf32>
    %17 = arith.mulf %16, %15 : vector<16x20x8xf32>
    %18 = arith.addf %13, %17 : vector<16x20x8xf32>
    %c4 = arith.constant 4 : index
    %19 = memref.load %arg1[%c4] : memref<5xf32, #tpu.memory_space<smem>>
    %c4_12 = arith.constant 4 : index
    %c0_13 = arith.constant 0 : index
    %c0_14 = arith.constant 0 : index
    %20 = vector.load %arg3[%c4_12, %c0_13, %c0_14] : memref<20x20x8xf32, #tpu.memory_space<vmem>>, vector<16x20x8xf32>
    %21 = vector.broadcast %19 : f32 to vector<16x20x8xf32>
    %22 = arith.mulf %21, %20 : vector<16x20x8xf32>
    %23 = arith.addf %18, %22 : vector<16x20x8xf32>
    %c0_15 = arith.constant 0 : index
    %c0_16 = arith.constant 0 : index
    %c0_17 = arith.constant 0 : index
    %24 = vector.load %arg5[%c0_15, %c0_16, %c0_17] : memref<16x20x8xf32, #tpu.memory_space<vmem>>, vector<16x20x8xf32>
    tpu.vector_store %arg5[%c0_15, %c0_16, %c0_17], %23 {strides = array<i32>} : memref<16x20x8xf32, #tpu.memory_space<vmem>>, vector<16x20x8xf32>,
    %c0_18 = arith.constant 0 : index
    %25 = memref.load %arg2[%c0_18] : memref<5xf32, #tpu.memory_space<smem>>
    %c0_19 = arith.constant 0 : index
    %c0_20 = arith.constant 0 : index
    %c0_21 = arith.constant 0 : index
    %26 = vector.load %arg5[%c0_19, %c0_20, %c0_21] : memref<16x20x8xf32, #tpu.memory_space<vmem>>, vector<16x16x8xf32>
    %27 = vector.broadcast %25 : f32 to vector<16x16x8xf32>
    %28 = arith.mulf %27, %26 : vector<16x16x8xf32>
    %c1_22 = arith.constant 1 : index
    %29 = memref.load %arg2[%c1_22] : memref<5xf32, #tpu.memory_space<smem>>
    %c0_23 = arith.constant 0 : index
    %c1_24 = arith.constant 1 : index
    %c0_25 = arith.constant 0 : index
    %30 = vector.load %arg5[%c0_23, %c1_24, %c0_25] : memref<16x20x8xf32, #tpu.memory_space<vmem>>, vector<16x16x8xf32>
    %31 = vector.broadcast %29 : f32 to vector<16x16x8xf32>
    %32 = arith.mulf %31, %30 : vector<16x16x8xf32>
    %33 = arith.addf %28, %32 : vector<16x16x8xf32>
    %c2_26 = arith.constant 2 : index
    %34 = memref.load %arg2[%c2_26] : memref<5xf32, #tpu.memory_space<smem>>
    %c0_27 = arith.constant 0 : index
    %c2_28 = arith.constant 2 : index
    %c0_29 = arith.constant 0 : index
    %35 = vector.load %arg5[%c0_27, %c2_28, %c0_29] : memref<16x20x8xf32, #tpu.memory_space<vmem>>, vector<16x16x8xf32>
    %36 = vector.broadcast %34 : f32 to vector<16x16x8xf32>
    %37 = arith.mulf %36, %35 : vector<16x16x8xf32>
    %38 = arith.addf %33, %37 : vector<16x16x8xf32>
    %c3_30 = arith.constant 3 : index
    %39 = memref.load %arg2[%c3_30] : memref<5xf32, #tpu.memory_space<smem>>
    %c0_31 = arith.constant 0 : index
    %c3_32 = arith.constant 3 : index
    %c0_33 = arith.constant 0 : index
    %40 = vector.load %arg5[%c0_31, %c3_32, %c0_33] : memref<16x20x8xf32, #tpu.memory_space<vmem>>, vector<16x16x8xf32>
    %41 = vector.broadcast %39 : f32 to vector<16x16x8xf32>
    %42 = arith.mulf %41, %40 : vector<16x16x8xf32>
    %43 = arith.addf %38, %42 : vector<16x16x8xf32>
    %c4_34 = arith.constant 4 : index
    %44 = memref.load %arg2[%c4_34] : memref<5xf32, #tpu.memory_space<smem>>
    %c0_35 = arith.constant 0 : index
    %c4_36 = arith.constant 4 : index
    %c0_37 = arith.constant 0 : index
    %45 = vector.load %arg5[%c0_35, %c4_36, %c0_37] : memref<16x20x8xf32, #tpu.memory_space<vmem>>, vector<16x16x8xf32>
    %46 = vector.broadcast %44 : f32 to vector<16x16x8xf32>
    %47 = arith.mulf %46, %45 : vector<16x16x8xf32>
    %48 = arith.addf %43, %47 : vector<16x16x8xf32>
    %c0_38 = arith.constant 0 : index
    %c0_39 = arith.constant 0 : index
    %c0_40 = arith.constant 0 : index
    %49 = vector.load %arg4[%c0_38, %c0_39, %c0_40] : memref<16x16x8xf32, #tpu.memory_space<vmem>>, vector<16x16x8xf32>
    tpu.vector_store %arg4[%c0_38, %c0_39, %c0_40], %48 {strides = array<i32>} : memref<16x16x8xf32, #tpu.memory_space<vmem>>, vector<16x16x8xf32>,
    return
  }
  func.func @transform_0(%arg0: i32) -> i32 {
    %c0_i32 = arith.constant 0 : i32
    %c0_i32_0 = arith.constant 0 : i32
    return %c0_i32 : i32
  }
  func.func @transform_1(%arg0: i32) -> i32 {
    %c0_i32 = arith.constant 0 : i32
    %c0_i32_0 = arith.constant 0 : i32
    return %c0_i32 : i32
  }
  func.func @transform_2(%arg0: i32) -> (i32, i32, i32) {
    %c0_i32 = arith.constant 0 : i32
    %c0_i32_0 = arith.constant 0 : i32
    %c0_i32_1 = arith.constant 0 : i32
    return %c0_i32, %c0_i32_0, %arg0 : i32, i32, i32
  }
  func.func @transform_3(%arg0: i32) -> (i32, i32, i32) {
    %c0_i32 = arith.constant 0 : i32
    %c0_i32_0 = arith.constant 0 : i32
    %c0_i32_1 = arith.constant 0 : i32
    return %c0_i32, %c0_i32_0, %arg0 : i32, i32, i32
  }
}

</mosaic_0001>

<bundles_post_ra>
// kernel: tpu_custom_call.1
= control target key start
LH: loop header
LB: loop body
LE: loop exit
PB: predicated region body
PF: predicated region fallthrough
CT: control target
= control target key end

     0   :  { %8 = vsyncpa [#allocation4], 0  ;;  %s2712_s0 = inlined_call_operand.vmem [shape: f32[5], index: 0, kind: input, shape index: {}]   ;;  %s2713_s1 = inlined_call_operand.vmem [shape: f32[5], index: 1, kind: input, shape index: {}]   ;;  %s2714_s2 = inlined_call_operand.vmem [shape: f32[20,20,8], index: 2, kind: input, shape index: {}]   ;;  %s2715_s3 = inlined_call_operand.vmem [shape: f32[16,16,8], index: 3, kind: output, shape index: {}]  }
   0x1   :  { %s16_s14 = sshll.u32 %s2712_s0, 4  ;;  %s17_s14 = int_to_ptr.vmem [resolvable:$true] %s16_s14 }
   0x2   :  { %9 = vsyncpa [#allocation6], 0  ;;  %s26_s17 = sshll.u32 %s2713_s1, 4  ;;  %s1473_s18 = scalar_lea.vmem %s17_s14, 16  ;;  %s27_s17 = int_to_ptr.vmem [resolvable:$true] %s26_s17 }
   0x3   :  { %p1474_p0 = scmp.ne.s32.totalorder %s17_s14, %s1473_s18  ;;  %p1478_p1 = scmp.lt.s32.totalorder %s17_s14, %s17_s14 }
   0x4   :  { %p1479_p2 = scmp.lt.s32.totalorder %s1473_s18, %s1473_s18 }
   0x6   :  { %p1480_p3 = por %p1479_p2, %p1478_p1 }
   0x8   :  { %p1481_p4 = pnand %p1480_p3, %p1474_p0 }
   0xa   :  { %1484 = shalt.err (!%p1481_p4)
}
   0xb   :  { %s1501_s19 = smov [#allocation3]   ;;  %s1485_s20 = scalar_lea.vmem %s27_s17, 16 }
   0xc   :  { %19 = dma.vmem_to_smem %s17_s14, 16, %s1501_s19, [#allocation4]  }
   0xd   :  { %p1486_p5 = scmp.ne.s32.totalorder %s27_s17, %s1485_s20  ;;  %p1490_p6 = scmp.lt.s32.totalorder %s27_s17, %s27_s17 }
   0xe   :  { %p1491_p7 = scmp.lt.s32.totalorder %s1485_s20, %s1485_s20 }
  0x10   :  { %p1492_p8 = por %p1491_p7, %p1490_p6 }
  0x12   :  { %p1493_p9 = pnand %p1492_p8, %p1486_p5 }
  0x14   :  { %1496 = shalt.err (!%p1493_p9)
}
  0x15   :  { %s1502_s0 = smov [#allocation5]  }
  0x16   :  { %29 = dma.vmem_to_smem %s27_s17, 16, %s1502_s0, [#allocation6]  }
  0x17   :  { %1497 = dma.done.wait [#allocation4], 16  }
  0x18   :  { %1498 = vsyncadd [#allocation4], 4294967280 }
  0x19   :  { %1499 = dma.done.wait [#allocation6], 16  }
  0x1a   :  { %1500 = vsyncadd [#allocation6], 4294967280 }
  0x1b   :  { %38 = sfence }
  0x1c   :  { %s39_s1 = sld [smem:[#allocation3]]  ;;  %s1271_s21 = sld [smem:[#allocation3 + $0x1]]  ;;  %v40_v0 = vld [vmem:[%s2714_s2] sm:$0xff]  ;;  %v1272_v1 = vld [vmem:[%s2714_s2 + $0x18] sm:$0xff]  ;;  %v41_v2 = vld [vmem:[%s2714_s2 + $0x8] sm:$0xff]  ;;  %vm725_vm0 = vcmask 64512  }
  0x1d   :  { %s1320_s22 = sld [smem:[#allocation3 + $0x2]]  ;;  %s1369_s23 = sld [smem:[#allocation3 + $0x3]]  ;;  %v1545_v5 = vld [vmem:[%s2714_s2 + $0x30] sm:$0xff]  ;;  %v1273_v6 = vld [vmem:[%s2714_s2 + $0x20] sm:$0xff]  ;;  %v1274_v12 = vld [vmem:[%s2714_s2 + $0x28] sm:$0xf] }
  0x1e   :  { %s1418_s24 = sld [smem:[#allocation3 + $0x4]]  ;;  %v42_v11 = vld [vmem:[%s2714_s2 + $0x10] sm:$0xf]  ;;  %v1567_v14 = vld [vmem:[%s2714_s2 + $0x48] sm:$0xff]  ;;  %v1575_v17 = vld [vmem:[%s2714_s2 + $0x38] sm:$0xff]  ;;  %vm728_vm1 = vcmask 60416  }
  0x1f   :  { %v1323_v18 = vld [vmem:[%s2714_s2 + $0x40] sm:$0xf]  ;;  %v1593_v24 = vld [vmem:[%s2714_s2 + $0x50] sm:$0xff]  ;;  %v1372_v25 = vld [vmem:[%s2714_s2 + $0x58] sm:$0xf]  ;;  %s2346_s0 = sld [smem:[#allocation5]] }
  0x20   :  { %v1585_v21 = vld [vmem:[%s2714_s2 + $0x60] sm:$0xff]  ;;  %v1605_v28 = vld [vmem:[%s2714_s2 + $0x68] sm:$0xff]  ;;  %v1421_v31 = vld [vmem:[%s2714_s2 + $0x70] sm:$0xf]  ;;  %s2372_s26 = sld [smem:[#allocation5 + $0x3]]  ;;  %s2374_s27 = sld [smem:[#allocation5 + $0x4]] }
  0x21   :  { %v45_v48 = vld [vmem:[%s2714_s2 + $0x28] sm:$0xf]  ;;  %v1277_v49 = vld [vmem:[%s2714_s2 + $0x40] sm:$0xf]  ;;  %v1634_v52 = vld [vmem:[%s2714_s2 + $0x78] sm:$0xff] }
  0x22   :  { %v1538_v3 = vstv %s39_s1  ;;  %v1540_v4 = vstv %s1271_s21  ;;  %v1326_v55 = vld [vmem:[%s2714_s2 + $0x58] sm:$0xf]  ;;  %v1375_v60 = vld [vmem:[%s2714_s2 + $0x70] sm:$0xf]  ;;  %s2353_s1 = sld [smem:[#allocation5 + $0x1]] }
  0x23   :  { %v89_v7 = vmul.f32 %v1538_v3, %v40_v0  ;;  %v188_v8 = vmul.f32 %v1272_v1, %v1540_v4  ;;  %v1552_v9 = vstv %s1320_s22  ;;  %v1554_v10 = vstv %s1369_s23  ;;  %v1654_v63 = vld [vmem:[%s2714_s2 + $0x80] sm:$0xff]  ;;  %s2360_s23 = sld [smem:[#allocation5 + $0x2]] }
  0x24   :  { %v335_v13 = vmul.f32 %v1545_v5, %v1552_v9  ;;  %v1569_v15 = vstv %s1418_s24  ;;  %v90_v16 = vmul.f32 %v1538_v3, %v41_v2  ;;  %v482_v20 = vmul.f32 %v1567_v14, %v1554_v10  ;;  %v1424_v2 = vld [vmem:[%s2714_s2 + $0x88] sm:$0xf] }
  0x25   :  { %v236_v19 = vadd.f32 %v188_v8, %v89_v7  ;;  %v189_v22 = vmul.f32 %v1273_v6, %v1540_v4  ;;  %v336_v23 = vmul.f32 %v1575_v17, %v1552_v9  ;;  %v629_v26 = vmul.f32 %v1585_v21, %v1569_v15 }
  0x26   :  { %v483_v27 = vmul.f32 %v1593_v24, %v1554_v10  ;;  %v91_v29 = vmul.f32 %v1538_v3, %v42_v11  ;;  %v190_v30 = vmul.f32 %v1274_v12, %v1540_v4  ;;  %v630_v34 = vmul.f32 %v1605_v28, %v1569_v15 }
  0x27   :  { %v383_v32 = vadd.f32 %v335_v13, %v236_v19  ;;  %v237_v33 = vadd.f32 %v189_v22, %v90_v16  ;;  %v337_v35 = vmul.f32 %v1323_v18, %v1552_v9  ;;  %v484_v37 = vmul.f32 %v1372_v25, %v1554_v10  ;;  %v48_v25 = vld [vmem:[%s2714_s2 + $0x40] sm:$0xf] }
  0x28   :  { %v238_v36 = vadd.f32 %v190_v30, %v91_v29  ;;  %v92_v38 = vmul.f32 %v1272_v1, %v1538_v3  ;;  %v191_v39 = vmul.f32 %v1545_v5, %v1540_v4  ;;  %v631_v42 = vmul.f32 %v1421_v31, %v1569_v15  ;;  %v1682_v29 = vld [vmem:[%s2714_s2 + $0x90] sm:$0xff]  ;;  %v1280_v31 = vld [vmem:[%s2714_s2 + $0x58] sm:$0xf] }
  0x29   :  { %v530_v40 = vadd.f32 %v482_v20, %v383_v32  ;;  %v384_v41 = vadd.f32 %v336_v23, %v237_v33  ;;  %v338_v43 = vmul.f32 %v1567_v14, %v1552_v9  ;;  %v485_v46 = vmul.f32 %v1585_v21, %v1554_v10  ;;  %v1329_v32 = vld [vmem:[%s2714_s2 + $0x70] sm:$0xf] }
  0x2a   :  { %v385_v44 = vadd.f32 %v337_v35, %v238_v36  ;;  %v239_v45 = vadd.f32 %v191_v39, %v92_v38  ;;  %v93_v47 = vmul.f32 %v1273_v6, %v1538_v3  ;;  %v192_v53 = vmul.f32 %v1575_v17, %v1540_v4  ;;  %v1378_v36 = vld [vmem:[%s2714_s2 + $0x88] sm:$0xf] }
  0x2b   :  { %v677_v50 = vadd.f32 %v629_v26, %v530_v40  ;;  %v531_v51 = vadd.f32 %v483_v27, %v384_v41  ;;  %v339_v54 = vmul.f32 %v1593_v24, %v1552_v9  ;;  %v632_v58 = vmul.f32 %v1634_v52, %v1569_v15 }
  0x2c   :  { %v532_v56 = vadd.f32 %v484_v37, %v385_v44  ;;  %v386_v57 = vadd.f32 %v338_v43, %v239_v45  ;;  %v486_v59 = vmul.f32 %v1605_v28, %v1554_v10  ;;  %v240_v62 = vadd.f32 %v192_v53, %v93_v47  ;;  %v1708_v43 = vld [vmem:[%s2714_s2 + $0x98] sm:$0xff] }
  0x2d   :  { %726 = vst.msk [vmem:[#allocation2] sm:$0xff] %vm725_vm0, %v677_v50  ;;  %v678_v61 = vadd.f32 %v630_v34, %v531_v51  ;;  %v94_v0 = vmul.f32 %v1538_v3, %v45_v48  ;;  %v193_v1 = vmul.f32 %v1277_v49, %v1540_v4  ;;  %v633_v8 = vmul.f32 %v1654_v63, %v1569_v15 }
  0x2e   :  { %v679_v6 = vadd.f32 %v631_v42, %v532_v56  ;;  %v533_v7 = vadd.f32 %v485_v46, %v386_v57  ;;  %v340_v11 = vmul.f32 %v1326_v55, %v1552_v9  ;;  %v387_v12 = vadd.f32 %v339_v54, %v240_v62  ;;  %v1427_v46 = vld [vmem:[%s2714_s2 + $0xa0] sm:$0xf] }
  0x2f   :  { %727 = vst.msk [vmem:[#allocation2 + $0x8] sm:$0xff] %vm725_vm0, %v678_v61  ;;  %v241_v13 = vadd.f32 %v193_v1, %v94_v0  ;;  %v487_v16 = vmul.f32 %v1375_v60, %v1554_v10  ;;  %v95_v18 = vmul.f32 %v1545_v5, %v1538_v3  ;;  %v634_v20 = vmul.f32 %v1424_v2, %v1569_v15  ;;  %v1737_v1 = vld [vmem:[%s2714_s2 + $0xa8] sm:$0xff]  ;;  %v1283_v2 = vld [vmem:[%s2714_s2 + $0x70] sm:$0xf] }
  0x30   :  { %729 = vst.msk [vmem:[#allocation2 + $0x10] sm:$0xf] %vm728_vm1, %v679_v6  ;;  %v680_v19 = vadd.f32 %v632_v58, %v533_v7  ;;  %v194_v22 = vmul.f32 %v1567_v14, %v1540_v4  ;;  %v341_v23 = vmul.f32 %v1585_v21, %v1552_v9  ;;  %v534_v26 = vadd.f32 %v486_v59, %v387_v12  ;;  %v1381_v12 = vld [vmem:[%s2714_s2 + $0xa0] sm:$0xf] }
  0x31   :  { %v388_v27 = vadd.f32 %v340_v11, %v241_v13  ;;  %v488_v5 = vmul.f32 %v1634_v52, %v1554_v10  ;;  %v96_v30 = vmul.f32 %v1575_v17, %v1538_v3  ;;  %v635_v34 = vmul.f32 %v1682_v29, %v1569_v15 }
  0x32   :  { %730 = vst.msk [vmem:[#allocation2 + $0x18] sm:$0xff] %vm725_vm0, %v680_v19  ;;  %v242_v33 = vadd.f32 %v194_v22, %v95_v18  ;;  %v195_v35 = vmul.f32 %v1593_v24, %v1540_v4  ;;  %v342_v17 = vmul.f32 %v1605_v28, %v1552_v9  ;;  %v681_v37 = vadd.f32 %v633_v8, %v534_v26  ;;  %v1760_v19 = vld [vmem:[%s2714_s2 + $0xb0] sm:$0xff] }
  0x33   :  { %v535_v38 = vadd.f32 %v487_v16, %v388_v27  ;;  %v489_v39 = vmul.f32 %v1654_v63, %v1554_v10  ;;  %v97_v40 = vmul.f32 %v1538_v3, %v48_v25  ;;  %v196_v44 = vmul.f32 %v1280_v31, %v1540_v4  ;;  %v1430_v27 = vld [vmem:[%s2714_s2 + $0xb8] sm:$0xf] }
  0x34   :  { %v389_v41 = vadd.f32 %v341_v23, %v242_v33  ;;  %v243_v42 = vadd.f32 %v195_v35, %v96_v30  ;;  %v343_v45 = vmul.f32 %v1329_v32, %v1552_v9  ;;  %731 = vst.msk [vmem:[#allocation2 + $0x20] sm:$0xff] %vm725_vm0, %v681_v37  ;;  %v636_v48 = vmul.f32 %v1708_v43, %v1569_v15 }
  0x35   :  { %v682_v47 = vadd.f32 %v634_v20, %v535_v38  ;;  %v490_v49 = vmul.f32 %v1378_v36, %v1554_v10  ;;  %v98_v50 = vmul.f32 %v1567_v14, %v1538_v3  ;;  %v244_v54 = vadd.f32 %v196_v44, %v97_v40  ;;  %v51_v14 = vld [vmem:[%s2714_s2 + $0x58] sm:$0xf]  ;;  %v54_v36 = vld [vmem:[%s2714_s2 + $0x70] sm:$0xf] }
  0x36   :  { %v536_v51 = vadd.f32 %v488_v5, %v389_v41  ;;  %v390_v53 = vadd.f32 %v342_v17, %v243_v42  ;;  %v197_v55 = vmul.f32 %v1585_v21, %v1540_v4  ;;  %v637_v56 = vmul.f32 %v1427_v46, %v1569_v15  ;;  %v1286_v46 = vld [vmem:[%s2714_s2 + $0x88] sm:$0xf] }
  0x37   :  { %732 = vst.msk [vmem:[#allocation2 + $0x28] sm:$0xf] %vm728_vm1, %v682_v47  ;;  %v344_v57 = vmul.f32 %v1634_v52, %v1552_v9  ;;  %v491_v58 = vmul.f32 %v1682_v29, %v1554_v10  ;;  %v99_v59 = vmul.f32 %v1593_v24, %v1538_v3  ;;  %v391_v62 = vadd.f32 %v343_v45, %v244_v54  ;;  %v1332_v24 = vld [vmem:[%s2714_s2 + $0x88] sm:$0xf]  ;;  %v1335_v47 = vld [vmem:[%s2714_s2 + $0xa0] sm:$0xf] }
  0x38   :  { %v683_v60 = vadd.f32 %v635_v34, %v536_v51  ;;  %v537_v61 = vadd.f32 %v489_v39, %v390_v53  ;;  %v245_v0 = vadd.f32 %v197_v55, %v98_v50  ;;  %v638_v6 = vmul.f32 %v1737_v1, %v1569_v15  ;;  %v1788_v39 = vld [vmem:[%s2714_s2 + $0xc0] sm:$0xff] }
  0x39   :  { %v198_v7 = vmul.f32 %v1605_v28, %v1540_v4  ;;  %v345_v8 = vmul.f32 %v1654_v63, %v1552_v9  ;;  %v492_v11 = vmul.f32 %v1708_v43, %v1554_v10  ;;  %v538_v16 = vadd.f32 %v490_v49, %v391_v62 }
  0x3a   :  { %733 = vst.msk [vmem:[#allocation2 + $0x30] sm:$0xff] %vm725_vm0, %v683_v60  ;;  %v684_v13 = vadd.f32 %v636_v48, %v537_v61  ;;  %v392_v18 = vadd.f32 %v344_v57, %v245_v0  ;;  %v100_v20 = vmul.f32 %v1538_v3, %v51_v14  ;;  %v639_v23 = vmul.f32 %v1760_v19, %v1569_v15  ;;  %v1384_v48 = vld [vmem:[%s2714_s2 + $0xb8] sm:$0xf]  ;;  %v1814_v57 = vld [vmem:[%s2714_s2 + $0xc8] sm:$0xff] }
  0x3b   :  { %v246_v22 = vadd.f32 %v198_v7, %v99_v59  ;;  %v199_v25 = vmul.f32 %v1283_v2, %v1540_v4  ;;  %v346_v26 = vmul.f32 %v1332_v24, %v1552_v9  ;;  %v685_v5 = vadd.f32 %v637_v56, %v538_v16 }
  0x3c   :  { %734 = vst.msk [vmem:[#allocation2 + $0x38] sm:$0xff] %vm725_vm0, %v684_v13  ;;  %v539_v30 = vadd.f32 %v491_v58, %v392_v18  ;;  %v493_v31 = vmul.f32 %v1381_v12, %v1554_v10  ;;  %v101_v32 = vmul.f32 %v1585_v21, %v1538_v3  ;;  %v200_v35 = vmul.f32 %v1634_v52, %v1540_v4  ;;  %v1433_v58 = vld [vmem:[%s2714_s2 + $0xd0] sm:$0xf]  ;;  %v57_v12 = vld [vmem:[%s2714_s2 + $0x88] sm:$0xf] }
  0x3d   :  { %v393_v33 = vadd.f32 %v345_v8, %v246_v22  ;;  %v247_v34 = vadd.f32 %v199_v25, %v100_v20  ;;  %v347_v17 = vmul.f32 %v1682_v29, %v1552_v9  ;;  %735 = vst.msk [vmem:[#allocation2 + $0x40] sm:$0xf] %vm728_vm1, %v685_v5  ;;  %v640_v38 = vmul.f32 %v1430_v27, %v1569_v15  ;;  %v1289_v20 = vld [vmem:[%s2714_s2 + $0xa0] sm:$0xf]  ;;  %v1846_v25 = vld [vmem:[%s2714_s2 + $0xd8] sm:$0xff] }
  0x3e   :  { %v686_v37 = vadd.f32 %v638_v6, %v539_v30  ;;  %v494_v21 = vmul.f32 %v1737_v1, %v1554_v10  ;;  %v102_v40 = vmul.f32 %v1605_v28, %v1538_v3  ;;  %v248_v44 = vadd.f32 %v200_v35, %v101_v32  ;;  %v1387_v5 = vld [vmem:[%s2714_s2 + $0xd0] sm:$0xf] }
  0x3f   :  { %v540_v41 = vadd.f32 %v492_v11, %v393_v33  ;;  %v394_v42 = vadd.f32 %v346_v26, %v247_v34  ;;  %v201_v45 = vmul.f32 %v1654_v63, %v1540_v4  ;;  %v641_v28 = vmul.f32 %v1788_v39, %v1569_v15 }
  0x40   :  { %736 = vst.msk [vmem:[#allocation2 + $0x48] sm:$0xff] %vm725_vm0, %v686_v37  ;;  %v348_v49 = vmul.f32 %v1708_v43, %v1552_v9  ;;  %v495_v50 = vmul.f32 %v1760_v19, %v1554_v10  ;;  %v103_v51 = vmul.f32 %v1538_v3, %v54_v36  ;;  %v395_v55 = vadd.f32 %v347_v17, %v248_v44  ;;  %v1867_v36 = vld [vmem:[%s2714_s2 + $0xe0] sm:$0xff] }
  0x41   :  { %v687_v53 = vadd.f32 %v639_v23, %v540_v41  ;;  %v541_v54 = vadd.f32 %v493_v31, %v394_v42  ;;  %v249_v56 = vadd.f32 %v201_v45, %v102_v40  ;;  %v642_v59 = vmul.f32 %v1814_v57, %v1569_v15 }
  0x42   :  { %v202_v14 = vmul.f32 %v1286_v46, %v1540_v4  ;;  %v349_v60 = vmul.f32 %v1335_v47, %v1552_v9  ;;  %v496_v61 = vmul.f32 %v1384_v48, %v1554_v10  ;;  %v542_v0 = vadd.f32 %v494_v21, %v395_v55  ;;  %v1894_v55 = vld [vmem:[%s2714_s2 + $0xf0] sm:$0xff] }
  0x43   :  { %737 = vst.msk [vmem:[#allocation2 + $0x50] sm:$0xff] %vm725_vm0, %v687_v53  ;;  %v688_v62 = vadd.f32 %v640_v38, %v541_v54  ;;  %v396_v2 = vadd.f32 %v348_v49, %v249_v56  ;;  %v104_v24 = vmul.f32 %v1634_v52, %v1538_v3  ;;  %v643_v7 = vmul.f32 %v1433_v58, %v1569_v15  ;;  %v1436_v38 = vld [vmem:[%s2714_s2 + $0xe8] sm:$0xf]  ;;  %v1292_v58 = vld [vmem:[%s2714_s2 + $0xb8] sm:$0xf] }
  0x44   :  { %v250_v6 = vadd.f32 %v202_v14, %v103_v51  ;;  %v203_v8 = vmul.f32 %v1682_v29, %v1540_v4  ;;  %v350_v11 = vmul.f32 %v1737_v1, %v1552_v9  ;;  %v689_v13 = vadd.f32 %v641_v28, %v542_v0  ;;  %v60_v51 = vld [vmem:[%s2714_s2 + $0xa0] sm:$0xf] }
  0x45   :  { %738 = vst.msk [vmem:[#allocation2 + $0x58] sm:$0xf] %vm728_vm1, %v688_v62  ;;  %v543_v16 = vadd.f32 %v495_v50, %v396_v2  ;;  %v497_v52 = vmul.f32 %v1788_v39, %v1554_v10  ;;  %v105_v18 = vmul.f32 %v1654_v63, %v1538_v3  ;;  %v204_v26 = vmul.f32 %v1708_v43, %v1540_v4  ;;  %v1338_v63 = vld [vmem:[%s2714_s2 + $0xb8] sm:$0xf] }
  0x46   :  { %v397_v22 = vadd.f32 %v349_v60, %v250_v6  ;;  %v251_v23 = vadd.f32 %v203_v8, %v104_v24  ;;  %v351_v27 = vmul.f32 %v1760_v19, %v1552_v9  ;;  %739 = vst.msk [vmem:[#allocation2 + $0x60] sm:$0xff] %vm725_vm0, %v689_v13  ;;  %v644_v31 = vmul.f32 %v1846_v25, %v1569_v15 }
  0x47   :  { %v690_v30 = vadd.f32 %v642_v59, %v543_v16  ;;  %v498_v32 = vmul.f32 %v1814_v57, %v1554_v10  ;;  %v106_v33 = vmul.f32 %v1538_v3, %v57_v12  ;;  %v252_v17 = vadd.f32 %v204_v26, %v105_v18  ;;  %v1341_v59 = vld [vmem:[%s2714_s2 + $0xd0] sm:$0xf]  ;;  %v1439_v16 = vld [vmem:[%s2714_s2 + $0x100] sm:$0xf] }
  0x48   :  { %v544_v34 = vadd.f32 %v496_v61, %v397_v22  ;;  %v398_v35 = vadd.f32 %v350_v11, %v251_v23  ;;  %v205_v37 = vmul.f32 %v1289_v20, %v1540_v4  ;;  %v645_v21 = vmul.f32 %v1867_v36, %v1569_v15  ;;  %v1920_v11 = vld [vmem:[%s2714_s2 + $0xf8] sm:$0xff] }
  0x49   :  { %740 = vst.msk [vmem:[#allocation2 + $0x68] sm:$0xff] %vm725_vm0, %v690_v30  ;;  %v352_v40 = vmul.f32 %v1338_v63, %v1552_v9  ;;  %v499_v41 = vmul.f32 %v1387_v5, %v1554_v10  ;;  %v107_v42 = vmul.f32 %v1682_v29, %v1538_v3  ;;  %v399_v46 = vadd.f32 %v351_v27, %v252_v17 }
  0x4a   :  { %v691_v44 = vadd.f32 %v643_v7, %v544_v34  ;;  %v545_v45 = vadd.f32 %v497_v52, %v398_v35  ;;  %v253_v47 = vadd.f32 %v205_v37, %v106_v33  ;;  %v646_v48 = vmul.f32 %v1436_v38, %v1569_v15  ;;  %v1949_v37 = vld [vmem:[%s2714_s2 + $0x108] sm:$0xff]  ;;  %v1295_v38 = vld [vmem:[%s2714_s2 + $0xd0] sm:$0xf] }
  0x4b   :  { %v206_v28 = vmul.f32 %v1737_v1, %v1540_v4  ;;  %v353_v49 = vmul.f32 %v1788_v39, %v1552_v9  ;;  %v500_v50 = vmul.f32 %v1846_v25, %v1554_v10  ;;  %v546_v53 = vadd.f32 %v498_v32, %v399_v46 }
  0x4c   :  { %741 = vst.msk [vmem:[#allocation2 + $0x70] sm:$0xf] %vm728_vm1, %v691_v44  ;;  %v692_v29 = vadd.f32 %v644_v31, %v545_v45  ;;  %v400_v54 = vadd.f32 %v352_v40, %v253_v47  ;;  %v108_v56 = vmul.f32 %v1708_v43, %v1538_v3  ;;  %v647_v60 = vmul.f32 %v1894_v55, %v1569_v15  ;;  %v1390_v43 = vld [vmem:[%s2714_s2 + $0xe8] sm:$0xf]  ;;  %v1393_v44 = vld [vmem:[%s2714_s2 + $0x100] sm:$0xf] }
  0x4d   :  { %v254_v14 = vadd.f32 %v206_v28, %v107_v42  ;;  %v207_v61 = vmul.f32 %v1760_v19, %v1540_v4  ;;  %v354_v62 = vmul.f32 %v1814_v57, %v1552_v9  ;;  %v693_v0 = vadd.f32 %v645_v21, %v546_v53  ;;  %v1442_v53 = vld [vmem:[%s2714_s2 + $0x118] sm:$0xf] }
  0x4e   :  { %742 = vst.msk [vmem:[#allocation2 + $0x78] sm:$0xff] %vm725_vm0, %v692_v29  ;;  %v547_v2 = vadd.f32 %v499_v41, %v400_v54  ;;  %v501_v24 = vmul.f32 %v1867_v36, %v1554_v10  ;;  %v109_v6 = vmul.f32 %v1538_v3, %v60_v51  ;;  %v208_v12 = vmul.f32 %v1292_v58, %v1540_v4 }
  0x4f   :  { %v401_v7 = vadd.f32 %v353_v49, %v254_v14  ;;  %v255_v8 = vadd.f32 %v207_v61, %v108_v56  ;;  %v355_v13 = vmul.f32 %v1341_v59, %v1552_v9  ;;  %743 = vst.msk [vmem:[#allocation2 + $0x80] sm:$0xff] %vm725_vm0, %v693_v0  ;;  %v648_v18 = vmul.f32 %v1920_v11, %v1569_v15 }
  0x50   :  { %v694_v52 = vadd.f32 %v646_v48, %v547_v2  ;;  %v502_v20 = vmul.f32 %v1390_v43, %v1554_v10  ;;  %v110_v22 = vmul.f32 %v1737_v1, %v1538_v3  ;;  %v256_v27 = vadd.f32 %v208_v12, %v109_v6  ;;  %v63_v1 = vld [vmem:[%s2714_s2 + $0xb8] sm:$0xf]  ;;  %v1972_v48 = vld [vmem:[%s2714_s2 + $0x110] sm:$0xff] }
  0x51   :  { %v548_v23 = vadd.f32 %v500_v50, %v401_v7  ;;  %v402_v26 = vadd.f32 %v354_v62, %v255_v8  ;;  %v209_v63 = vmul.f32 %v1788_v39, %v1540_v4  ;;  %v649_v5 = vmul.f32 %v1439_v16, %v1569_v15  ;;  %v66_v43 = vld [vmem:[%s2714_s2 + $0xd0] sm:$0xf]  ;;  %v1298_v16 = vld [vmem:[%s2714_s2 + $0xe8] sm:$0xf] }
  0x52   :  { %744 = vst.msk [vmem:[#allocation2 + $0x88] sm:$0xf] %vm728_vm1, %v694_v52  ;;  %v356_v30 = vmul.f32 %v1846_v25, %v1552_v9  ;;  %v503_v31 = vmul.f32 %v1894_v55, %v1554_v10  ;;  %v111_v32 = vmul.f32 %v1760_v19, %v1538_v3  ;;  %v403_v35 = vadd.f32 %v355_v13, %v256_v27  ;;  %v1344_v19 = vld [vmem:[%s2714_s2 + $0xe8] sm:$0xf]  ;;  %v1347_v52 = vld [vmem:[%s2714_s2 + $0x100] sm:$0xf] }
  0x53   :  { %v695_v33 = vadd.f32 %v647_v60, %v548_v23  ;;  %v549_v34 = vadd.f32 %v501_v24, %v402_v26  ;;  %v257_v17 = vadd.f32 %v209_v63, %v110_v22  ;;  %v650_v21 = vmul.f32 %v1949_v37, %v1569_v15  ;;  %v2000_v24 = vld [vmem:[%s2714_s2 + $0x120] sm:$0xff] }
  0x54   :  { %v210_v40 = vmul.f32 %v1814_v57, %v1540_v4  ;;  %v357_v41 = vmul.f32 %v1867_v36, %v1552_v9  ;;  %v504_v42 = vmul.f32 %v1920_v11, %v1554_v10  ;;  %v550_v46 = vadd.f32 %v502_v20, %v403_v35 }
  0x55   :  { %745 = vst.msk [vmem:[#allocation2 + $0x90] sm:$0xff] %vm725_vm0, %v695_v33  ;;  %v696_v45 = vadd.f32 %v648_v18, %v549_v34  ;;  %v404_v47 = vadd.f32 %v356_v30, %v257_v17  ;;  %v112_v28 = vmul.f32 %v1538_v3, %v63_v1  ;;  %v651_v50 = vmul.f32 %v1972_v48, %v1569_v15  ;;  %v1396_v18 = vld [vmem:[%s2714_s2 + $0x118] sm:$0xf]  ;;  %v2026_v30 = vld [vmem:[%s2714_s2 + $0x128] sm:$0xff] }
  0x56   :  { %v258_v49 = vadd.f32 %v210_v40, %v111_v32  ;;  %v211_v51 = vmul.f32 %v1295_v38, %v1540_v4  ;;  %v358_v29 = vmul.f32 %v1344_v19, %v1552_v9  ;;  %v697_v54 = vadd.f32 %v649_v5, %v550_v46 }
  0x57   :  { %746 = vst.msk [vmem:[#allocation2 + $0x98] sm:$0xff] %vm725_vm0, %v696_v45  ;;  %v551_v56 = vadd.f32 %v503_v31, %v404_v47  ;;  %v505_v58 = vmul.f32 %v1393_v44, %v1554_v10  ;;  %v113_v59 = vmul.f32 %v1788_v39, %v1538_v3  ;;  %v212_v61 = vmul.f32 %v1846_v25, %v1540_v4  ;;  %v1445_v31 = vld [vmem:[%s2714_s2 + $0x130] sm:$0xf]  ;;  %v69_v44 = vld [vmem:[%s2714_s2 + $0xe8] sm:$0xf] }
  0x58   :  { %v405_v14 = vadd.f32 %v357_v41, %v258_v49  ;;  %v259_v60 = vadd.f32 %v211_v51, %v112_v28  ;;  %v359_v62 = vmul.f32 %v1894_v55, %v1552_v9  ;;  %747 = vst.msk [vmem:[#allocation2 + $0xa0] sm:$0xf] %vm728_vm1, %v697_v54  ;;  %v652_v2 = vmul.f32 %v1442_v53, %v1569_v15  ;;  %v1301_v28 = vld [vmem:[%s2714_s2 + $0x100] sm:$0xf]  ;;  %v2058_v51 = vld [vmem:[%s2714_s2 + $0x138] sm:$0xff] }
  0x59   :  { %v698_v0 = vadd.f32 %v650_v21, %v551_v56  ;;  %v506_v39 = vmul.f32 %v1949_v37, %v1554_v10  ;;  %v114_v6 = vmul.f32 %v1814_v57, %v1538_v3  ;;  %v260_v12 = vadd.f32 %v212_v61, %v113_v59  ;;  %v1399_v54 = vld [vmem:[%s2714_s2 + $0x130] sm:$0xf] }
  0x5a   :  { %v552_v7 = vadd.f32 %v504_v42, %v405_v14  ;;  %v406_v8 = vadd.f32 %v358_v29, %v259_v60  ;;  %v213_v13 = vmul.f32 %v1867_v36, %v1540_v4  ;;  %v653_v57 = vmul.f32 %v2000_v24, %v1569_v15 }
  0x5b   :  { %748 = vst.msk [vmem:[#allocation2 + $0xa8] sm:$0xff] %vm725_vm0, %v698_v0  ;;  %v360_v20 = vmul.f32 %v1920_v11, %v1552_v9  ;;  %v507_v22 = vmul.f32 %v1972_v48, %v1554_v10  ;;  %v115_v23 = vmul.f32 %v1538_v3, %v66_v43  ;;  %v407_v63 = vadd.f32 %v359_v62, %v260_v12  ;;  %v2079_v43 = vld [vmem:[%s2714_s2 + $0x140] sm:$0xff] }
  0x5c   :  { %v699_v26 = vadd.f32 %v651_v50, %v552_v7  ;;  %v553_v27 = vadd.f32 %v505_v58, %v406_v8  ;;  %v261_v5 = vadd.f32 %v213_v13, %v114_v6  ;;  %v654_v32 = vmul.f32 %v2026_v30, %v1569_v15 }
  0x5d   :  { %v214_v1 = vmul.f32 %v1298_v16, %v1540_v4  ;;  %v361_v33 = vmul.f32 %v1347_v52, %v1552_v9  ;;  %v508_v34 = vmul.f32 %v1396_v18, %v1554_v10  ;;  %v554_v17 = vadd.f32 %v506_v39, %v407_v63  ;;  %v2106_v63 = vld [vmem:[%s2714_s2 + $0x150] sm:$0xff] }
  0x5e   :  { %749 = vst.msk [vmem:[#allocation2 + $0xb0] sm:$0xff] %vm725_vm0, %v699_v26  ;;  %v700_v35 = vadd.f32 %v652_v2, %v553_v27  ;;  %v408_v38 = vadd.f32 %v360_v20, %v261_v5  ;;  %v116_v19 = vmul.f32 %v1846_v25, %v1538_v3  ;;  %v655_v40 = vmul.f32 %v1445_v31, %v1569_v15  ;;  %v1448_v2 = vld [vmem:[%s2714_s2 + $0x148] sm:$0xf]  ;;  %v1304_v31 = vld [vmem:[%s2714_s2 + $0x118] sm:$0xf] }
  0x5f   :  { %v262_v21 = vadd.f32 %v214_v1, %v115_v23  ;;  %v215_v41 = vmul.f32 %v1894_v55, %v1540_v4  ;;  %v362_v42 = vmul.f32 %v1949_v37, %v1552_v9  ;;  %v701_v45 = vadd.f32 %v653_v57, %v554_v17  ;;  %v72_v23 = vld [vmem:[%s2714_s2 + $0x100] sm:$0xf] }
  0x60   :  { %750 = vst.msk [vmem:[#allocation2 + $0xb8] sm:$0xf] %vm728_vm1, %v700_v35  ;;  %v555_v46 = vadd.f32 %v507_v22, %v408_v38  ;;  %v509_v25 = vmul.f32 %v2000_v24, %v1554_v10  ;;  %v117_v47 = vmul.f32 %v1867_v36, %v1538_v3  ;;  %v216_v29 = vmul.f32 %v1920_v11, %v1540_v4  ;;  %v1350_v36 = vld [vmem:[%s2714_s2 + $0x118] sm:$0xf] }
  0x61   :  { %v409_v49 = vadd.f32 %v361_v33, %v262_v21  ;;  %v263_v50 = vadd.f32 %v215_v41, %v116_v19  ;;  %v363_v53 = vmul.f32 %v1972_v48, %v1552_v9  ;;  %751 = vst.msk [vmem:[#allocation2 + $0xc0] sm:$0xff] %vm725_vm0, %v701_v45  ;;  %v656_v58 = vmul.f32 %v2058_v51, %v1569_v15 }
  0x62   :  { %v702_v56 = vadd.f32 %v654_v32, %v555_v46  ;;  %v510_v59 = vmul.f32 %v2026_v30, %v1554_v10  ;;  %v118_v14 = vmul.f32 %v1538_v3, %v69_v44  ;;  %v264_v62 = vadd.f32 %v216_v29, %v117_v47  ;;  %v1353_v32 = vld [vmem:[%s2714_s2 + $0x130] sm:$0xf]  ;;  %v1451_v46 = vld [vmem:[%s2714_s2 + $0x160] sm:$0xf] }
  0x63   :  { %v556_v60 = vadd.f32 %v508_v34, %v409_v49  ;;  %v410_v61 = vadd.f32 %v362_v42, %v263_v50  ;;  %v217_v0 = vmul.f32 %v1301_v28, %v1540_v4  ;;  %v657_v39 = vmul.f32 %v2079_v43, %v1569_v15  ;;  %v2132_v42 = vld [vmem:[%s2714_s2 + $0x158] sm:$0xff] }
  0x64   :  { %752 = vst.msk [vmem:[#allocation2 + $0xc8] sm:$0xff] %vm725_vm0, %v702_v56  ;;  %v364_v6 = vmul.f32 %v1350_v36, %v1552_v9  ;;  %v511_v7 = vmul.f32 %v1399_v54, %v1554_v10  ;;  %v119_v8 = vmul.f32 %v1894_v55, %v1538_v3  ;;  %v411_v16 = vadd.f32 %v363_v53, %v264_v62 }
  0x65   :  { %v703_v12 = vadd.f32 %v655_v40, %v556_v60  ;;  %v557_v13 = vadd.f32 %v509_v25, %v410_v61  ;;  %v265_v52 = vadd.f32 %v217_v0, %v118_v14  ;;  %v658_v18 = vmul.f32 %v1448_v2, %v1569_v15  ;;  %v2161_v0 = vld [vmem:[%s2714_s2 + $0x168] sm:$0xff]  ;;  %v1307_v2 = vld [vmem:[%s2714_s2 + $0x130] sm:$0xf] }
  0x66   :  { %v218_v57 = vmul.f32 %v1949_v37, %v1540_v4  ;;  %v365_v20 = vmul.f32 %v2000_v24, %v1552_v9  ;;  %v512_v22 = vmul.f32 %v2058_v51, %v1554_v10  ;;  %v558_v26 = vadd.f32 %v510_v59, %v411_v16 }
  0x67   :  { %753 = vst.msk [vmem:[#allocation2 + $0xd0] sm:$0xf] %vm728_vm1, %v703_v12  ;;  %v704_v55 = vadd.f32 %v656_v58, %v557_v13  ;;  %v412_v27 = vadd.f32 %v364_v6, %v265_v52  ;;  %v120_v5 = vmul.f32 %v1920_v11, %v1538_v3  ;;  %v659_v33 = vmul.f32 %v2106_v63, %v1569_v15  ;;  %v1402_v11 = vld [vmem:[%s2714_s2 + $0x148] sm:$0xf]  ;;  %v1405_v12 = vld [vmem:[%s2714_s2 + $0x160] sm:$0xf] }
  0x68   :  { %v266_v1 = vadd.f32 %v218_v57, %v119_v8  ;;  %v219_v34 = vmul.f32 %v1972_v48, %v1540_v4  ;;  %v366_v35 = vmul.f32 %v2026_v30, %v1552_v9  ;;  %v705_v17 = vadd.f32 %v657_v39, %v558_v26  ;;  %v1454_v26 = vld [vmem:[%s2714_s2 + $0x178] sm:$0xf] }
  0x69   :  { %754 = vst.msk [vmem:[#allocation2 + $0xd8] sm:$0xff] %vm725_vm0, %v704_v55  ;;  %v559_v38 = vadd.f32 %v511_v7, %v412_v27  ;;  %v513_v19 = vmul.f32 %v2079_v43, %v1554_v10  ;;  %v121_v21 = vmul.f32 %v1538_v3, %v72_v23  ;;  %v220_v44 = vmul.f32 %v1304_v31, %v1540_v4 }
  0x6a   :  { %v413_v40 = vadd.f32 %v365_v20, %v266_v1  ;;  %v267_v41 = vadd.f32 %v219_v34, %v120_v5  ;;  %v367_v45 = vmul.f32 %v1353_v32, %v1552_v9  ;;  %755 = vst.msk [vmem:[#allocation2 + $0xe0] sm:$0xff] %vm725_vm0, %v705_v17  ;;  %v660_v47 = vmul.f32 %v2132_v42, %v1569_v15 }
  0x6b   :  { %v706_v25 = vadd.f32 %v658_v18, %v559_v38  ;;  %v514_v28 = vmul.f32 %v1402_v11, %v1554_v10  ;;  %v122_v49 = vmul.f32 %v1949_v37, %v1538_v3  ;;  %v268_v53 = vadd.f32 %v220_v44, %v121_v21  ;;  %v75_v37 = vld [vmem:[%s2714_s2 + $0x118] sm:$0xf]  ;;  %v2184_v18 = vld [vmem:[%s2714_s2 + $0x170] sm:$0xff] }
  0x6c   :  { %v560_v50 = vadd.f32 %v512_v22, %v413_v40  ;;  %v414_v29 = vadd.f32 %v366_v35, %v267_v41  ;;  %v221_v36 = vmul.f32 %v2000_v24, %v1540_v4  ;;  %v661_v54 = vmul.f32 %v1451_v46, %v1569_v15  ;;  %v78_v11 = vld [vmem:[%s2714_s2 + $0x130] sm:$0xf]  ;;  %v1310_v46 = vld [vmem:[%s2714_s2 + $0x148] sm:$0xf] }
  0x6d   :  { %756 = vst.msk [vmem:[#allocation2 + $0xe8] sm:$0xf] %vm728_vm1, %v706_v25  ;;  %v368_v56 = vmul.f32 %v2058_v51, %v1552_v9  ;;  %v515_v58 = vmul.f32 %v2106_v63, %v1554_v10  ;;  %v123_v59 = vmul.f32 %v1972_v48, %v1538_v3  ;;  %v415_v61 = vadd.f32 %v367_v45, %v268_v53  ;;  %v1356_v48 = vld [vmem:[%s2714_s2 + $0x148] sm:$0xf]  ;;  %v1359_v25 = vld [vmem:[%s2714_s2 + $0x160] sm:$0xf] }
  0x6e   :  { %v707_v14 = vadd.f32 %v659_v33, %v560_v50  ;;  %v561_v60 = vadd.f32 %v513_v19, %v414_v29  ;;  %v269_v62 = vadd.f32 %v221_v36, %v122_v49  ;;  %v662_v39 = vmul.f32 %v2161_v0, %v1569_v15  ;;  %v2212_v19 = vld [vmem:[%s2714_s2 + $0x180] sm:$0xff] }
  0x6f   :  { %v222_v6 = vmul.f32 %v2026_v30, %v1540_v4  ;;  %v369_v7 = vmul.f32 %v2079_v43, %v1552_v9  ;;  %v516_v8 = vmul.f32 %v2132_v42, %v1554_v10  ;;  %v562_v16 = vadd.f32 %v514_v28, %v415_v61 }
  0x70   :  { %757 = vst.msk [vmem:[#allocation2 + $0xf0] sm:$0xff] %vm725_vm0, %v707_v14  ;;  %v708_v13 = vadd.f32 %v660_v47, %v561_v60  ;;  %v416_v52 = vadd.f32 %v368_v56, %v269_v62  ;;  %v124_v57 = vmul.f32 %v1538_v3, %v75_v37  ;;  %v663_v22 = vmul.f32 %v2184_v18, %v1569_v15  ;;  %v1408_v47 = vld [vmem:[%s2714_s2 + $0x178] sm:$0xf]  ;;  %v2238_v56 = vld [vmem:[%s2714_s2 + $0x188] sm:$0xff] }
  0x71   :  { %v270_v20 = vadd.f32 %v222_v6, %v123_v59  ;;  %v223_v23 = vmul.f32 %v1307_v2, %v1540_v4  ;;  %v370_v55 = vmul.f32 %v1356_v48, %v1552_v9  ;;  %v709_v27 = vadd.f32 %v661_v54, %v562_v16 }
  0x72   :  { %758 = vst.msk [vmem:[#allocation2 + $0xf8] sm:$0xff] %vm725_vm0, %v708_v13  ;;  %v563_v5 = vadd.f32 %v515_v58, %v416_v52  ;;  %v517_v31 = vmul.f32 %v1405_v12, %v1554_v10  ;;  %v125_v32 = vmul.f32 %v2000_v24, %v1538_v3  ;;  %v224_v34 = vmul.f32 %v2058_v51, %v1540_v4  ;;  %v1457_v58 = vld [vmem:[%s2714_s2 + $0x190] sm:$0xf]  ;;  %v81_v12 = vld [vmem:[%s2714_s2 + $0x148] sm:$0xf] }
  0x73   :  { %v417_v1 = vadd.f32 %v369_v7, %v270_v20  ;;  %v271_v33 = vadd.f32 %v223_v23, %v124_v57  ;;  %v371_v35 = vmul.f32 %v2106_v63, %v1552_v9  ;;  %759 = vst.msk [vmem:[#allocation2 + $0x100] sm:$0xf] %vm728_vm1, %v709_v27  ;;  %v664_v38 = vmul.f32 %v1454_v26, %v1569_v15  ;;  %v1313_v57 = vld [vmem:[%s2714_s2 + $0x160] sm:$0xf]  ;;  %v2270_v23 = vld [vmem:[%s2714_s2 + $0x198] sm:$0xff] }
  0x74   :  { %v710_v17 = vadd.f32 %v662_v39, %v563_v5  ;;  %v518_v24 = vmul.f32 %v2161_v0, %v1554_v10  ;;  %v126_v21 = vmul.f32 %v2026_v30, %v1538_v3  ;;  %v272_v44 = vadd.f32 %v224_v34, %v125_v32  ;;  %v1411_v27 = vld [vmem:[%s2714_s2 + $0x190] sm:$0xf] }
  0x75   :  { %v564_v40 = vadd.f32 %v516_v8, %v417_v1  ;;  %v418_v41 = vadd.f32 %v370_v55, %v271_v33  ;;  %v225_v45 = vmul.f32 %v2079_v43, %v1540_v4  ;;  %v665_v30 = vmul.f32 %v2212_v19, %v1569_v15 }
  0x76   :  { %760 = vst.msk [vmem:[#allocation2 + $0x108] sm:$0xff] %vm725_vm0, %v710_v17  ;;  %v372_v28 = vmul.f32 %v2132_v42, %v1552_v9  ;;  %v519_v49 = vmul.f32 %v2184_v18, %v1554_v10  ;;  %v127_v50 = vmul.f32 %v1538_v3, %v78_v11  ;;  %v419_v36 = vadd.f32 %v371_v35, %v272_v44  ;;  %v2291_v11 = vld [vmem:[%s2714_s2 + $0x1a0] sm:$0xff] }
  0x77   :  { %v711_v29 = vadd.f32 %v663_v22, %v564_v40  ;;  %v565_v53 = vadd.f32 %v517_v31, %v418_v41  ;;  %v273_v54 = vadd.f32 %v225_v45, %v126_v21  ;;  %v666_v59 = vmul.f32 %v2238_v56, %v1569_v15 }
  0x78   :  { %v226_v37 = vmul.f32 %v1310_v46, %v1540_v4  ;;  %v373_v14 = vmul.f32 %v1359_v25, %v1552_v9  ;;  %v520_v60 = vmul.f32 %v1408_v47, %v1554_v10  ;;  %v566_v62 = vadd.f32 %v518_v24, %v419_v36  ;;  %v1461_v36 = vld [vmem:[%s2714_s2 + $0x1b0] sm:$0xff] }
  0x79   :  { %761 = vst.msk [vmem:[#allocation2 + $0x110] sm:$0xff] %vm725_vm0, %v711_v29  ;;  %v712_v61 = vadd.f32 %v664_v38, %v565_v53  ;;  %v420_v2 = vadd.f32 %v372_v28, %v273_v54  ;;  %v128_v48 = vmul.f32 %v2058_v51, %v1538_v3  ;;  %v667_v6 = vmul.f32 %v1457_v58, %v1569_v15  ;;  %v1460_v38 = vld [vmem:[%s2714_s2 + $0x1a8] sm:$0xf]  ;;  %v1316_v58 = vld [vmem:[%s2714_s2 + $0x178] sm:$0xf] }
  0x7a   :  { %v274_v39 = vadd.f32 %v226_v37, %v127_v50  ;;  %v227_v7 = vmul.f32 %v2106_v63, %v1540_v4  ;;  %v374_v8 = vmul.f32 %v2161_v0, %v1552_v9  ;;  %v713_v13 = vadd.f32 %v665_v30, %v566_v62  ;;  %v84_v50 = vld [vmem:[%s2714_s2 + $0x160] sm:$0xf] }
  0x7b   :  { %762 = vst.msk [vmem:[#allocation2 + $0x118] sm:$0xf] %vm728_vm1, %v712_v61  ;;  %v567_v16 = vadd.f32 %v519_v49, %v420_v2  ;;  %v521_v51 = vmul.f32 %v2212_v19, %v1554_v10  ;;  %v129_v52 = vmul.f32 %v2079_v43, %v1538_v3  ;;  %v228_v55 = vmul.f32 %v2132_v42, %v1540_v4  ;;  %v1362_v43 = vld [vmem:[%s2714_s2 + $0x178] sm:$0xf] }
  0x7c   :  { %v421_v20 = vadd.f32 %v373_v14, %v274_v39  ;;  %v275_v22 = vadd.f32 %v227_v7, %v128_v48  ;;  %v375_v26 = vmul.f32 %v2184_v18, %v1552_v9  ;;  %763 = vst.msk [vmem:[#allocation2 + $0x120] sm:$0xff] %vm725_vm0, %v713_v13  ;;  %v668_v31 = vmul.f32 %v2270_v23, %v1569_v15 }
  0x7d   :  { %v714_v5 = vadd.f32 %v666_v59, %v567_v16  ;;  %v522_v32 = vmul.f32 %v2238_v56, %v1554_v10  ;;  %v130_v1 = vmul.f32 %v1538_v3, %v81_v12  ;;  %v276_v35 = vadd.f32 %v228_v55, %v129_v52  ;;  %v1365_v59 = vld [vmem:[%s2714_s2 + $0x190] sm:$0xf]  ;;  %v1463_v16 = vld [vmem:[%s2714_s2 + $0x1c0] sm:$0xf] }
  0x7e   :  { %v568_v33 = vadd.f32 %v520_v60, %v421_v20  ;;  %v422_v34 = vadd.f32 %v374_v8, %v275_v22  ;;  %v229_v17 = vmul.f32 %v1313_v57, %v1540_v4  ;;  %v669_v24 = vmul.f32 %v2291_v11, %v1569_v15  ;;  %v1462_v8 = vld [vmem:[%s2714_s2 + $0x1b8] sm:$0xff] }
  0x7f   :  { %764 = vst.msk [vmem:[#allocation2 + $0x128] sm:$0xff] %vm725_vm0, %v714_v5  ;;  %v376_v21 = vmul.f32 %v1362_v43, %v1552_v9  ;;  %v523_v40 = vmul.f32 %v1411_v27, %v1554_v10  ;;  %v131_v41 = vmul.f32 %v2106_v63, %v1538_v3  ;;  %v423_v46 = vadd.f32 %v375_v26, %v276_v35  ;;  %v1464_v27 = vld [vmem:[%s2714_s2 + $0x1c8] sm:$0xff] }
  0x80   :  { %v715_v44 = vadd.f32 %v667_v6, %v568_v33  ;;  %v569_v45 = vadd.f32 %v521_v51, %v422_v34  ;;  %v277_v25 = vadd.f32 %v229_v17, %v130_v1  ;;  %v670_v47 = vmul.f32 %v1460_v38, %v1569_v15  ;;  %v1368_v17 = vld [vmem:[%s2714_s2 + $0x1a8] sm:$0xf] }
  0x81   :  { %v230_v30 = vmul.f32 %v2161_v0, %v1540_v4  ;;  %v377_v28 = vmul.f32 %v2212_v19, %v1552_v9  ;;  %v524_v49 = vmul.f32 %v2270_v23, %v1554_v10  ;;  %v570_v29 = vadd.f32 %v522_v32, %v423_v46 }
  0x82   :  { %765 = vst.msk [vmem:[#allocation2 + $0x130] sm:$0xf] %vm728_vm1, %v715_v44  ;;  %v716_v63 = vadd.f32 %v668_v31, %v569_v45  ;;  %v424_v53 = vadd.f32 %v376_v21, %v277_v25  ;;  %v132_v54 = vmul.f32 %v2132_v42, %v1538_v3  ;;  %v671_v14 = vmul.f32 %v1461_v36, %v1569_v15  ;;  %v1414_v42 = vld [vmem:[%s2714_s2 + $0x1a8] sm:$0xf] }
  0x83   :  { %v278_v37 = vadd.f32 %v230_v30, %v131_v41  ;;  %v231_v60 = vmul.f32 %v2184_v18, %v1540_v4  ;;  %v378_v61 = vmul.f32 %v2238_v56, %v1552_v9  ;;  %v717_v62 = vadd.f32 %v669_v24, %v570_v29  ;;  %v1417_v41 = vld [vmem:[%s2714_s2 + $0x1c0] sm:$0xf] }
  0x84   :  { %766 = vst.msk [vmem:[#allocation2 + $0x138] sm:$0xff] %vm725_vm0, %v716_v63  ;;  %v571_v2 = vadd.f32 %v523_v40, %v424_v53  ;;  %v525_v48 = vmul.f32 %v2291_v11, %v1554_v10  ;;  %v133_v39 = vmul.f32 %v1538_v3, %v84_v50  ;;  %v232_v12 = vmul.f32 %v1316_v58, %v1540_v4  ;;  %v842_v50 = vld [vmem:[#allocation2 + $0x1] sm:$0xff] }
  0x85   :  { %v425_v6 = vadd.f32 %v377_v28, %v278_v37  ;;  %v279_v7 = vadd.f32 %v231_v60, %v132_v54  ;;  %v379_v13 = vmul.f32 %v1365_v59, %v1552_v9  ;;  %767 = vst.msk [vmem:[#allocation2 + $0x140] sm:$0xff] %vm725_vm0, %v717_v62  ;;  %v672_v52 = vmul.f32 %v1462_v8, %v1569_v15  ;;  %v777_v59 = vld [vmem:[#allocation2 + $0x8] sm:$0xff] }
  0x86   :  { %v718_v51 = vadd.f32 %v670_v47, %v571_v2  ;;  %v526_v57 = vmul.f32 %v1414_v42, %v1554_v10  ;;  %v134_v20 = vmul.f32 %v2161_v0, %v1538_v3  ;;  %v280_v26 = vadd.f32 %v232_v12, %v133_v39  ;;  %v776_v47 = vld [vmem:[#allocation2] sm:$0xff]  ;;  %v843_v37 = vld [vmem:[#allocation2 + $0x9] sm:$0xff] }
  0x87   :  { %v572_v22 = vadd.f32 %v524_v49, %v425_v6  ;;  %v426_v55 = vadd.f32 %v378_v61, %v279_v7  ;;  %v233_v43 = vmul.f32 %v2212_v19, %v1540_v4  ;;  %v673_v5 = vmul.f32 %v1463_v16, %v1569_v15  ;;  %v87_v19 = vld [vmem:[%s2714_s2 + $0x178] sm:$0xf]  ;;  %v941_v6 = vld [vmem:[#allocation2 + $0xa] sm:$0xff] }
  0x88   :  { %768 = vst.msk [vmem:[#allocation2 + $0x148] sm:$0xf] %vm728_vm1, %v718_v51  ;;  %v380_v0 = vmul.f32 %v2270_v23, %v1552_v9  ;;  %v527_v31 = vmul.f32 %v1461_v36, %v1554_v10  ;;  %v135_v32 = vmul.f32 %v2184_v18, %v1538_v3  ;;  %v427_v34 = vadd.f32 %v379_v13, %v280_v26  ;;  %v1465_v23 = vld [vmem:[%s2714_s2 + $0x1d0] sm:$0xff]  ;;  %v1466_v49 = vld [vmem:[%s2714_s2 + $0x1d8] sm:$0xf]  ;;  %v940_v36 = vld [vmem:[#allocation2 + $0x2] sm:$0xff] }
  0x89   :  { %v719_v1 = vadd.f32 %v671_v14, %v572_v22  ;;  %v573_v33 = vadd.f32 %v525_v48, %v426_v55  ;;  %v281_v35 = vadd.f32 %v233_v43, %v134_v20  ;;  %v1319_v18 = vld [vmem:[%s2714_s2 + $0x190] sm:$0xf]  ;;  %v674_v38 = vmul.f32 %v1464_v27, %v1569_v15  ;;  %v1038_v48 = vld [vmem:[#allocation2 + $0x3] sm:$0xff]  ;;  %v778_v16 = vld [vmem:[#allocation2 + $0x18] sm:$0xff] }
  0x8a   :  { %v234_v24 = vmul.f32 %v2238_v56, %v1540_v4  ;;  %v381_v21 = vmul.f32 %v2291_v11, %v1552_v9  ;;  %v528_v40 = vmul.f32 %v1462_v8, %v1554_v10  ;;  %v574_v45 = vadd.f32 %v526_v57, %v427_v34  ;;  %v1136_v8 = vld [vmem:[#allocation2 + $0x4] sm:$0xff]  ;;  %v844_v51 = vld [vmem:[#allocation2 + $0x19] sm:$0xff]  ;;  %v1137_v22 = vld [vmem:[#allocation2 + $0xc] sm:$0xff] }
  0x8b   :  { %769 = vst.msk [vmem:[#allocation2 + $0x150] sm:$0xff] %vm725_vm0, %v719_v1  ;;  %v720_v44 = vadd.f32 %v672_v52, %v573_v33  ;;  %v428_v46 = vadd.f32 %v380_v0, %v281_v35  ;;  %v136_v25 = vmul.f32 %v1538_v3, %v87_v19  ;;  %v675_v30 = vmul.f32 %v1465_v23, %v1569_v15  ;;  %v1039_v20 = vld [vmem:[#allocation2 + $0xb] sm:$0xff]  ;;  %v779_v0 = vld [vmem:[#allocation2 + $0x20] sm:$0xff] }
  0x8c   :  { %v282_v56 = vadd.f32 %v234_v24, %v135_v32  ;;  %v235_v11 = vmul.f32 %v1319_v18, %v1540_v4  ;;  %v382_v28 = vmul.f32 %v1368_v17, %v1552_v9  ;;  %v721_v63 = vadd.f32 %v673_v5, %v574_v45  ;;  %v942_v5 = vld [vmem:[#allocation2 + $0x1a] sm:$0xff]  ;;  %v943_v35 = vld [vmem:[#allocation2 + $0x22] sm:$0xff]  ;;  %v780_v24 = vld [vmem:[#allocation2 + $0x30] sm:$0xff] }
  0x8d   :  { %770 = vst.msk [vmem:[#allocation2 + $0x158] sm:$0xff] %vm725_vm0, %v720_v44  ;;  %v575_v29 = vadd.f32 %v527_v31, %v428_v46  ;;  %v529_v3 = vmul.f32 %v1417_v41, %v1554_v10  ;;  %v2405_v53 = vstv %s2346_s0  ;;  %v2409_v58 = vstv %s2353_s1  ;;  %v845_v31 = vld [vmem:[#allocation2 + $0x21] sm:$0xff] }
  0x8e   :  { %v429_v54 = vadd.f32 %v381_v21, %v282_v56  ;;  %v283_v4 = vadd.f32 %v235_v11, %v136_v25  ;;  %v809_v9 = vmul.f32 %v2405_v53, %v776_v47  ;;  %771 = vst.msk [vmem:[#allocation2 + $0x160] sm:$0xf] %vm728_vm1, %v721_v63  ;;  %v676_v60 = vmul.f32 %v1466_v49, %v1569_v15  ;;  %v1040_v34 = vld [vmem:[#allocation2 + $0x1b] sm:$0xff]  ;;  %v846_v21 = vld [vmem:[#allocation2 + $0x31] sm:$0xff]  ;;  %v1041_v25 = vld [vmem:[#allocation2 + $0x23] sm:$0xff] }
  0x8f   :  { %v722_v14 = vadd.f32 %v674_v38, %v575_v29  ;;  %v875_v10 = vmul.f32 %v2409_v58, %v842_v50  ;;  %v2415_v61 = vstv %s2360_s23  ;;  %v2419_v39 = vstv %s2372_s26  ;;  %v1138_v44 = vld [vmem:[#allocation2 + $0x1c] sm:$0xff]  ;;  %v944_v47 = vld [vmem:[#allocation2 + $0x32] sm:$0xff]  ;;  %v1139_v49 = vld [vmem:[#allocation2 + $0x24] sm:$0xff] }
  0x90   :  { %v576_v42 = vadd.f32 %v528_v40, %v429_v54  ;;  %v430_v62 = vadd.f32 %v382_v28, %v283_v4  ;;  %v973_v2 = vmul.f32 %v2415_v61, %v940_v36  ;;  %v2423_v12 = vstv %s2374_s27  ;;  %v781_v50 = vld [vmem:[#allocation2 + $0x38] sm:$0xff] }
  0x91   :  { %772 = vst.msk [vmem:[#allocation2 + $0x168] sm:$0xff] %vm725_vm0, %v722_v14  ;;  %v907_v7 = vadd.f32 %v875_v10, %v809_v9  ;;  %v810_v15 = vmul.f32 %v2405_v53, %v777_v59  ;;  %v876_v13 = vmul.f32 %v2409_v58, %v843_v37  ;;  %v1071_v26 = vmul.f32 %v2419_v39, %v1038_v48  ;;  %v1042_v54 = vld [vmem:[#allocation2 + $0x33] sm:$0xff]  ;;  %v782_v10 = vld [vmem:[#allocation2 + $0x48] sm:$0xff] }
  0x92   :  { %v723_v52 = vadd.f32 %v675_v30, %v576_v42  ;;  %v577_v57 = vadd.f32 %v529_v3, %v430_v62  ;;  %v974_v27 = vmul.f32 %v2415_v61, %v941_v6  ;;  %v1169_v19 = vmul.f32 %v2423_v12, %v1136_v8  ;;  %v1140_v4 = vld [vmem:[#allocation2 + $0x34] sm:$0xff]  ;;  %v848_v8 = vld [vmem:[#allocation2 + $0x49] sm:$0xff] }
  0x93   :  { %v1005_v55 = vadd.f32 %v973_v2, %v907_v7  ;;  %v908_v43 = vadd.f32 %v876_v13, %v810_v15  ;;  %v811_v1 = vmul.f32 %v2405_v53, %v778_v16  ;;  %v877_v33 = vmul.f32 %v2409_v58, %v844_v51  ;;  %v847_v9 = vld [vmem:[#allocation2 + $0x39] sm:$0xff] }
  0x94   :  { %773 = vst.msk [vmem:[#allocation2 + $0x170] sm:$0xff] %vm725_vm0, %v723_v52  ;;  %v724_v32 = vadd.f32 %v676_v60, %v577_v57  ;;  %v1072_v17 = vmul.f32 %v2419_v39, %v1039_v20  ;;  %v1170_v38 = vmul.f32 %v2423_v12, %v1137_v22  ;;  %v975_v41 = vmul.f32 %v2415_v61, %v942_v5  ;;  %v945_v6 = vld [vmem:[#allocation2 + $0x3a] sm:$0xff]  ;;  %v783_v57 = vld [vmem:[#allocation2 + $0x50] sm:$0xff] }
  0x95   :  { %v1103_v23 = vadd.f32 %v1071_v26, %v1005_v55  ;;  %v1006_v18 = vadd.f32 %v974_v27, %v908_v43  ;;  %v909_v40 = vadd.f32 %v877_v33, %v811_v1  ;;  %v812_v45 = vmul.f32 %v2405_v53, %v779_v0  ;;  %v1043_v7 = vld [vmem:[#allocation2 + $0x3b] sm:$0xff]  ;;  %v946_v43 = vld [vmem:[#allocation2 + $0x4a] sm:$0xff]  ;;  %v947_v1 = vld [vmem:[#allocation2 + $0x52] sm:$0xff] }
  0x96   :  { %774 = vst.msk [vmem:[#allocation2 + $0x178] sm:$0xf] %vm728_vm1, %v724_v32  ;;  %v878_v46 = vmul.f32 %v2409_v58, %v845_v31  ;;  %v1073_v11 = vmul.f32 %v2419_v39, %v1040_v34  ;;  %v976_v28 = vmul.f32 %v2415_v61, %v943_v35  ;;  %v813_v3 = vmul.f32 %v2405_v53, %v780_v24  ;;  %v1141_v52 = vld [vmem:[#allocation2 + $0x3c] sm:$0xff]  ;;  %v849_v27 = vld [vmem:[#allocation2 + $0x51] sm:$0xff] }
  0x97   :  { %v1201_v56 = vadd.f32 %v1169_v19, %v1103_v23  ;;  %v1104_v30 = vadd.f32 %v1072_v17, %v1006_v18  ;;  %v1007_v63 = vadd.f32 %v975_v41, %v909_v40  ;;  %v879_v36 = vmul.f32 %v2409_v58, %v846_v21  ;;  %v1044_v19 = vld [vmem:[#allocation2 + $0x4b] sm:$0xff]  ;;  %v784_v33 = vld [vmem:[#allocation2 + $0x60] sm:$0xff] }
  0x98   :  { %v910_v29 = vadd.f32 %v878_v46, %v812_v45  ;;  %v1171_v37 = vmul.f32 %v2423_v12, %v1138_v44  ;;  %v1074_v14 = vmul.f32 %v2419_v39, %v1041_v25  ;;  %v977_v60 = vmul.f32 %v2415_v61, %v944_v47  ;;  %v1142_v18 = vld [vmem:[#allocation2 + $0x4c] sm:$0xff]  ;;  %v948_v45 = vld [vmem:[#allocation2 + $0x62] sm:$0xff] }
  0x99   :  { %1233 = vst.msk [vmem:[%s2715_s3] sm:$0xff] %vm725_vm0, %v1201_v56  ;;  %v1202_v59 = vadd.f32 %v1170_v38, %v1104_v30  ;;  %v1105_v42 = vadd.f32 %v1073_v11, %v1007_v63  ;;  %v911_v2 = vadd.f32 %v879_v36, %v813_v3  ;;  %v814_v48 = vmul.f32 %v2405_v53, %v781_v50  ;;  %v850_v38 = vld [vmem:[#allocation2 + $0x61] sm:$0xff]  ;;  %v1045_v44 = vld [vmem:[#allocation2 + $0x53] sm:$0xff]  ;;  %v851_v36 = vld [vmem:[#allocation2 + $0x69] sm:$0xff] }
  0x9a   :  { %v1008_v62 = vadd.f32 %v976_v28, %v910_v29  ;;  %v1172_v15 = vmul.f32 %v2423_v12, %v1139_v49  ;;  %v1075_v13 = vmul.f32 %v2419_v39, %v1042_v54  ;;  %v1173_v16 = vmul.f32 %v2423_v12, %v1140_v4  ;;  %v785_v46 = vld [vmem:[#allocation2 + $0x68] sm:$0xff]  ;;  %v1143_v30 = vld [vmem:[#allocation2 + $0x54] sm:$0xff] }
  0x9b   :  { %1234 = vst.msk [vmem:[%s2715_s3 + $0x8] sm:$0xff] %vm725_vm0, %v1202_v59  ;;  %v880_v51 = vmul.f32 %v2409_v58, %v847_v9  ;;  %v1203_v20 = vadd.f32 %v1171_v37, %v1105_v42  ;;  %v1009_v55 = vadd.f32 %v977_v60, %v911_v2  ;;  %v815_v26 = vmul.f32 %v2405_v53, %v782_v10  ;;  %v1046_v29 = vld [vmem:[#allocation2 + $0x63] sm:$0xff]  ;;  %v786_v37 = vld [vmem:[#allocation2 + $0x78] sm:$0xff]  ;;  %v1047_v2 = vld [vmem:[#allocation2 + $0x6b] sm:$0xff] }
  0x9c   :  { %v1106_v22 = vadd.f32 %v1074_v14, %v1008_v62  ;;  %v978_v0 = vmul.f32 %v2415_v61, %v945_v6  ;;  %v1076_v31 = vmul.f32 %v2419_v39, %v1043_v7  ;;  %v881_v32 = vmul.f32 %v2409_v58, %v848_v8  ;;  %v1144_v3 = vld [vmem:[#allocation2 + $0x64] sm:$0xff] }
  0x9d   :  { %v912_v5 = vadd.f32 %v880_v51, %v814_v48  ;;  %1235 = vst.msk [vmem:[%s2715_s3 + $0x10] sm:$0xff] %vm725_vm0, %v1203_v20  ;;  %v1107_v35 = vadd.f32 %v1075_v13, %v1009_v55  ;;  %v1174_v23 = vmul.f32 %v2423_v12, %v1141_v52  ;;  %v816_v17 = vmul.f32 %v2405_v53, %v783_v57  ;;  %v949_v62 = vld [vmem:[#allocation2 + $0x6a] sm:$0xff]  ;;  %v852_v48 = vld [vmem:[#allocation2 + $0x79] sm:$0xff]  ;;  %v853_v55 = vld [vmem:[#allocation2 + $0x81] sm:$0xff] }
  0x9e   :  { %v1204_v34 = vadd.f32 %v1172_v15, %v1106_v22  ;;  %v913_v21 = vadd.f32 %v881_v32, %v815_v26  ;;  %v979_v40 = vmul.f32 %v2415_v61, %v946_v43  ;;  %v882_v41 = vmul.f32 %v2409_v58, %v849_v27  ;;  %v1145_v13 = vld [vmem:[#allocation2 + $0x6c] sm:$0xff]  ;;  %v950_v22 = vld [vmem:[#allocation2 + $0x7a] sm:$0xff] }
  0x9f   :  { %v1010_v24 = vadd.f32 %v978_v0, %v912_v5  ;;  %v1205_v25 = vadd.f32 %v1173_v16, %v1107_v35  ;;  %v1077_v47 = vmul.f32 %v2419_v39, %v1044_v19  ;;  %v980_v56 = vmul.f32 %v2415_v61, %v947_v1  ;;  %v787_v16 = vld [vmem:[#allocation2 + $0x80] sm:$0xff]  ;;  %v788_v32 = vld [vmem:[#allocation2 + $0x90] sm:$0xff] }
  0xa0   :  { %1236 = vst.msk [vmem:[%s2715_s3 + $0x18] sm:$0xff] %vm725_vm0, %v1204_v34  ;;  %v817_v11 = vmul.f32 %v2405_v53, %v784_v33  ;;  %v1011_v49 = vadd.f32 %v979_v40, %v913_v21  ;;  %v914_v50 = vadd.f32 %v882_v41, %v816_v17  ;;  %v883_v63 = vmul.f32 %v2409_v58, %v850_v38  ;;  %v1048_v0 = vld [vmem:[#allocation2 + $0x7b] sm:$0xff]  ;;  %v1049_v21 = vld [vmem:[#allocation2 + $0x83] sm:$0xff]  ;;  %v952_v40 = vld [vmem:[#allocation2 + $0x92] sm:$0xff] }
  0xa1   :  { %v1108_v28 = vadd.f32 %v1076_v31, %v1010_v24  ;;  %1237 = vst.msk [vmem:[%s2715_s3 + $0x20] sm:$0xff] %vm725_vm0, %v1205_v25  ;;  %v1175_v54 = vmul.f32 %v2423_v12, %v1142_v18  ;;  %v1078_v4 = vmul.f32 %v2419_v39, %v1045_v44  ;;  %v981_v9 = vmul.f32 %v2415_v61, %v948_v45  ;;  %v951_v31 = vld [vmem:[#allocation2 + $0x82] sm:$0xff]  ;;  %v789_v41 = vld [vmem:[#allocation2 + $0x98] sm:$0xff] }
  0xa2   :  { %v818_v59 = vmul.f32 %v2405_v53, %v785_v46  ;;  %v1109_v60 = vadd.f32 %v1077_v47, %v1011_v49  ;;  %v1012_v10 = vadd.f32 %v980_v56, %v914_v50  ;;  %v915_v42 = vadd.f32 %v883_v63, %v817_v11  ;;  %v1146_v34 = vld [vmem:[#allocation2 + $0x7c] sm:$0xff]  ;;  %v1147_v25 = vld [vmem:[#allocation2 + $0x84] sm:$0xff]  ;;  %v1050_v49 = vld [vmem:[#allocation2 + $0x93] sm:$0xff] }
  0xa3   :  { %v1206_v14 = vadd.f32 %v1174_v23, %v1108_v28  ;;  %v1176_v6 = vmul.f32 %v2423_v12, %v1143_v30  ;;  %v1079_v7 = vmul.f32 %v2419_v39, %v1046_v29  ;;  %v1177_v8 = vmul.f32 %v2423_v12, %v1144_v3  ;;  %v854_v23 = vld [vmem:[#allocation2 + $0x91] sm:$0xff]  ;;  %v855_v63 = vld [vmem:[#allocation2 + $0x99] sm:$0xff] }
  0xa4   :  { %v884_v15 = vmul.f32 %v2409_v58, %v851_v36  ;;  %v1207_v51 = vadd.f32 %v1175_v54, %v1109_v60  ;;  %v1110_v52 = vadd.f32 %v1078_v4, %v1012_v10  ;;  %v1013_v57 = vadd.f32 %v981_v9, %v915_v42  ;;  %v1148_v50 = vld [vmem:[#allocation2 + $0x94] sm:$0xff]  ;;  %v790_v4 = vld [vmem:[#allocation2 + $0xa8] sm:$0xff] }
  0xa5   :  { %1238 = vst.msk [vmem:[%s2715_s3 + $0x28] sm:$0xff] %vm725_vm0, %v1206_v14  ;;  %v819_v20 = vmul.f32 %v2405_v53, %v786_v37  ;;  %v982_v43 = vmul.f32 %v2415_v61, %v949_v62  ;;  %v1080_v27 = vmul.f32 %v2419_v39, %v1047_v2  ;;  %v885_v5 = vmul.f32 %v2409_v58, %v852_v48  ;;  %v953_v60 = vld [vmem:[#allocation2 + $0x9a] sm:$0xff]  ;;  %v856_v42 = vld [vmem:[#allocation2 + $0xa9] sm:$0xff] }
  0xa6   :  { %v916_v26 = vadd.f32 %v884_v15, %v818_v59  ;;  %1239 = vst.msk [vmem:[%s2715_s3 + $0x30] sm:$0xff] %vm725_vm0, %v1207_v51  ;;  %v1208_v19 = vadd.f32 %v1176_v6, %v1110_v52  ;;  %v1111_v1 = vadd.f32 %v1079_v7, %v1013_v57  ;;  %v1178_v33 = vmul.f32 %v2423_v12, %v1145_v13  ;;  %v1051_v10 = vld [vmem:[#allocation2 + $0x9b] sm:$0xff]  ;;  %v954_v52 = vld [vmem:[#allocation2 + $0xaa] sm:$0xff] }
  0xa7   :  { %v820_v35 = vmul.f32 %v2405_v53, %v787_v16  ;;  %v917_v17 = vadd.f32 %v885_v5, %v819_v20  ;;  %v983_v38 = vmul.f32 %v2415_v61, %v950_v22  ;;  %v886_v24 = vmul.f32 %v2409_v58, %v853_v55  ;;  %v1149_v7 = vld [vmem:[#allocation2 + $0x9c] sm:$0xff]  ;;  %v857_v57 = vld [vmem:[#allocation2 + $0xb1] sm:$0xff] }
  0xa8   :  { %v1014_v18 = vadd.f32 %v982_v43, %v916_v26  ;;  %1240 = vst.msk [vmem:[%s2715_s3 + $0x38] sm:$0xff] %vm725_vm0, %v1208_v19  ;;  %v1209_v44 = vadd.f32 %v1177_v8, %v1111_v1  ;;  %v1081_v45 = vmul.f32 %v2419_v39, %v1048_v0  ;;  %v984_v46 = vmul.f32 %v2415_v61, %v951_v31  ;;  %v791_v8 = vld [vmem:[#allocation2 + $0xb0] sm:$0xff]  ;;  %v792_v5 = vld [vmem:[#allocation2 + $0xc0] sm:$0xff] }
  0xa9   :  { %v821_v47 = vmul.f32 %v2405_v53, %v788_v32  ;;  %v1015_v30 = vadd.f32 %v983_v38, %v917_v17  ;;  %v918_v11 = vadd.f32 %v886_v24, %v820_v35  ;;  %v887_v28 = vmul.f32 %v2409_v58, %v854_v23  ;;  %v1052_v43 = vld [vmem:[#allocation2 + $0xab] sm:$0xff]  ;;  %v1053_v17 = vld [vmem:[#allocation2 + $0xb3] sm:$0xff]  ;;  %v956_v38 = vld [vmem:[#allocation2 + $0xc2] sm:$0xff] }
  0xaa   :  { %v1112_v56 = vadd.f32 %v1080_v27, %v1014_v18  ;;  %1241 = vst.msk [vmem:[%s2715_s3 + $0x40] sm:$0xff] %vm725_vm0, %v1209_v44  ;;  %v1179_v29 = vmul.f32 %v2423_v12, %v1146_v34  ;;  %v1082_v3 = vmul.f32 %v2419_v39, %v1049_v21  ;;  %v985_v36 = vmul.f32 %v2415_v61, %v952_v40  ;;  %v955_v27 = vld [vmem:[#allocation2 + $0xb2] sm:$0xff]  ;;  %v793_v24 = vld [vmem:[#allocation2 + $0xc8] sm:$0xff] }
  0xab   :  { %v822_v54 = vmul.f32 %v2405_v53, %v789_v41  ;;  %v1113_v59 = vadd.f32 %v1081_v45, %v1015_v30  ;;  %v1016_v37 = vadd.f32 %v984_v46, %v918_v11  ;;  %v919_v14 = vadd.f32 %v887_v28, %v821_v47  ;;  %v1150_v19 = vld [vmem:[#allocation2 + $0xac] sm:$0xff]  ;;  %v1151_v44 = vld [vmem:[#allocation2 + $0xb4] sm:$0xff]  ;;  %v1054_v30 = vld [vmem:[#allocation2 + $0xc3] sm:$0xff] }
  0xac   :  { %v1210_v9 = vadd.f32 %v1178_v33, %v1112_v56  ;;  %v1180_v62 = vmul.f32 %v2423_v12, %v1147_v25  ;;  %v1083_v2 = vmul.f32 %v2419_v39, %v1050_v49  ;;  %v1181_v48 = vmul.f32 %v2423_v12, %v1148_v50  ;;  %v858_v33 = vld [vmem:[#allocation2 + $0xc1] sm:$0xff]  ;;  %v859_v28 = vld [vmem:[#allocation2 + $0xc9] sm:$0xff] }
  0xad   :  { %v888_v6 = vmul.f32 %v2409_v58, %v855_v63  ;;  %v1211_v15 = vadd.f32 %v1179_v29, %v1113_v59  ;;  %v1114_v13 = vadd.f32 %v1082_v3, %v1016_v37  ;;  %v1017_v16 = vadd.f32 %v985_v36, %v919_v14  ;;  %v1152_v11 = vld [vmem:[#allocation2 + $0xc4] sm:$0xff]  ;;  %v794_v3 = vld [vmem:[#allocation2 + $0xd8] sm:$0xff] }
  0xae   :  { %1242 = vst.msk [vmem:[%s2715_s3 + $0x48] sm:$0xff] %vm725_vm0, %v1210_v9  ;;  %v823_v51 = vmul.f32 %v2405_v53, %v790_v4  ;;  %v986_v22 = vmul.f32 %v2415_v61, %v953_v60  ;;  %v1084_v55 = vmul.f32 %v2419_v39, %v1051_v10  ;;  %v889_v26 = vmul.f32 %v2409_v58, %v856_v42  ;;  %v957_v59 = vld [vmem:[#allocation2 + $0xca] sm:$0xff]  ;;  %v860_v14 = vld [vmem:[#allocation2 + $0xd9] sm:$0xff] }
  0xaf   :  { %v920_v20 = vadd.f32 %v888_v6, %v822_v54  ;;  %1243 = vst.msk [vmem:[%s2715_s3 + $0x50] sm:$0xff] %vm725_vm0, %v1211_v15  ;;  %v1212_v0 = vadd.f32 %v1180_v62, %v1114_v13  ;;  %v1115_v31 = vadd.f32 %v1083_v2, %v1017_v16  ;;  %v1182_v32 = vmul.f32 %v2423_v12, %v1149_v7  ;;  %v1055_v37 = vld [vmem:[#allocation2 + $0xcb] sm:$0xff]  ;;  %v958_v13 = vld [vmem:[#allocation2 + $0xda] sm:$0xff] }
  0xb0   :  { %v824_v1 = vmul.f32 %v2405_v53, %v791_v8  ;;  %v921_v35 = vadd.f32 %v889_v26, %v823_v51  ;;  %v987_v23 = vmul.f32 %v2415_v61, %v954_v52  ;;  %v890_v18 = vmul.f32 %v2409_v58, %v857_v57  ;;  %v1153_v2 = vld [vmem:[#allocation2 + $0xcc] sm:$0xff]  ;;  %v861_v16 = vld [vmem:[#allocation2 + $0xe1] sm:$0xff] }
  0xb1   :  { %v1018_v34 = vadd.f32 %v986_v22, %v920_v20  ;;  %1244 = vst.msk [vmem:[%s2715_s3 + $0x58] sm:$0xff] %vm725_vm0, %v1212_v0  ;;  %v1213_v21 = vadd.f32 %v1181_v48, %v1115_v31  ;;  %v1085_v40 = vmul.f32 %v2419_v39, %v1052_v43  ;;  %v988_v41 = vmul.f32 %v2415_v61, %v955_v27  ;;  %v795_v48 = vld [vmem:[#allocation2 + $0xe0] sm:$0xff]  ;;  %v796_v26 = vld [vmem:[#allocation2 + $0xf0] sm:$0xff] }
  0xb2   :  { %v825_v45 = vmul.f32 %v2405_v53, %v792_v5  ;;  %v1019_v25 = vadd.f32 %v987_v23, %v921_v35  ;;  %v922_v47 = vadd.f32 %v890_v18, %v824_v1  ;;  %v891_v56 = vmul.f32 %v2409_v58, %v858_v33  ;;  %v1056_v22 = vld [vmem:[#allocation2 + $0xdb] sm:$0xff]  ;;  %v1057_v35 = vld [vmem:[#allocation2 + $0xe3] sm:$0xff]  ;;  %v960_v23 = vld [vmem:[#allocation2 + $0xf2] sm:$0xff] }
  0xb3   :  { %v1116_v46 = vadd.f32 %v1084_v55, %v1018_v34  ;;  %1245 = vst.msk [vmem:[%s2715_s3 + $0x60] sm:$0xff] %vm725_vm0, %v1213_v21  ;;  %v1183_v49 = vmul.f32 %v2423_v12, %v1150_v19  ;;  %v1086_v50 = vmul.f32 %v2419_v39, %v1053_v17  ;;  %v989_v63 = vmul.f32 %v2415_v61, %v956_v38  ;;  %v959_v55 = vld [vmem:[#allocation2 + $0xe2] sm:$0xff]  ;;  %v797_v18 = vld [vmem:[#allocation2 + $0xf8] sm:$0xff] }
  0xb4   :  { %v826_v29 = vmul.f32 %v2405_v53, %v793_v24  ;;  %v1117_v54 = vadd.f32 %v1085_v40, %v1019_v25  ;;  %v1020_v4 = vadd.f32 %v988_v41, %v922_v47  ;;  %v923_v9 = vadd.f32 %v891_v56, %v825_v45  ;;  %v1154_v0 = vld [vmem:[#allocation2 + $0xdc] sm:$0xff]  ;;  %v1155_v21 = vld [vmem:[#allocation2 + $0xe4] sm:$0xff]  ;;  %v1058_v25 = vld [vmem:[#allocation2 + $0xf3] sm:$0xff] }
  0xb5   :  { %v1214_v36 = vadd.f32 %v1182_v32, %v1116_v46  ;;  %v1184_v60 = vmul.f32 %v2423_v12, %v1151_v44  ;;  %v1087_v10 = vmul.f32 %v2419_v39, %v1054_v30  ;;  %v1185_v42 = vmul.f32 %v2423_v12, %v1152_v11  ;;  %v862_v32 = vld [vmem:[#allocation2 + $0xf1] sm:$0xff]  ;;  %v863_v56 = vld [vmem:[#allocation2 + $0xf9] sm:$0xff] }
  0xb6   :  { %v892_v62 = vmul.f32 %v2409_v58, %v859_v28  ;;  %v1215_v6 = vadd.f32 %v1183_v49, %v1117_v54  ;;  %v1118_v7 = vadd.f32 %v1086_v50, %v1020_v4  ;;  %v1021_v8 = vadd.f32 %v989_v63, %v923_v9  ;;  %v1156_v47 = vld [vmem:[#allocation2 + $0xf4] sm:$0xff]  ;;  %v798_v50 = vld [vmem:[#allocation2 + $0x108] sm:$0xff] }
  0xb7   :  { %1246 = vst.msk [vmem:[%s2715_s3 + $0x68] sm:$0xff] %vm725_vm0, %v1214_v36  ;;  %v827_v15 = vmul.f32 %v2405_v53, %v794_v3  ;;  %v990_v52 = vmul.f32 %v2415_v61, %v957_v59  ;;  %v1088_v57 = vmul.f32 %v2419_v39, %v1055_v37  ;;  %v893_v20 = vmul.f32 %v2409_v58, %v860_v14  ;;  %v961_v54 = vld [vmem:[#allocation2 + $0xfa] sm:$0xff]  ;;  %v864_v9 = vld [vmem:[#allocation2 + $0x109] sm:$0xff] }
  0xb8   :  { %v924_v51 = vadd.f32 %v892_v62, %v826_v29  ;;  %1247 = vst.msk [vmem:[%s2715_s3 + $0x70] sm:$0xff] %vm725_vm0, %v1215_v6  ;;  %v1216_v43 = vadd.f32 %v1184_v60, %v1118_v7  ;;  %v1119_v27 = vadd.f32 %v1087_v10, %v1021_v8  ;;  %v1186_v5 = vmul.f32 %v2423_v12, %v1153_v2  ;;  %v1059_v4 = vld [vmem:[#allocation2 + $0xfb] sm:$0xff]  ;;  %v962_v7 = vld [vmem:[#allocation2 + $0x10a] sm:$0xff] }
  0xb9   :  { %v828_v31 = vmul.f32 %v2405_v53, %v795_v48  ;;  %v925_v1 = vadd.f32 %v893_v20, %v827_v15  ;;  %v991_v33 = vmul.f32 %v2415_v61, %v958_v13  ;;  %v894_v34 = vmul.f32 %v2409_v58, %v861_v16  ;;  %v1157_v10 = vld [vmem:[#allocation2 + $0xfc] sm:$0xff]  ;;  %v865_v8 = vld [vmem:[#allocation2 + $0x111] sm:$0xff] }
  0xba   :  { %v1022_v19 = vadd.f32 %v990_v52, %v924_v51  ;;  %1248 = vst.msk [vmem:[%s2715_s3 + $0x78] sm:$0xff] %vm725_vm0, %v1216_v43  ;;  %v1217_v17 = vadd.f32 %v1185_v42, %v1119_v27  ;;  %v1089_v38 = vmul.f32 %v2419_v39, %v1056_v22  ;;  %v992_v24 = vmul.f32 %v2415_v61, %v959_v55  ;;  %v799_v42 = vld [vmem:[#allocation2 + $0x110] sm:$0xff]  ;;  %v800_v20 = vld [vmem:[#allocation2 + $0x120] sm:$0xff] }
  0xbb   :  { %v829_v40 = vmul.f32 %v2405_v53, %v796_v26  ;;  %v1023_v44 = vadd.f32 %v991_v33, %v925_v1  ;;  %v926_v45 = vadd.f32 %v894_v34, %v828_v31  ;;  %v895_v46 = vmul.f32 %v2409_v58, %v862_v32  ;;  %v1060_v52 = vld [vmem:[#allocation2 + $0x10b] sm:$0xff]  ;;  %v1061_v1 = vld [vmem:[#allocation2 + $0x113] sm:$0xff]  ;;  %v964_v33 = vld [vmem:[#allocation2 + $0x122] sm:$0xff] }
  0xbc   :  { %v1120_v41 = vadd.f32 %v1088_v57, %v1022_v19  ;;  %1249 = vst.msk [vmem:[%s2715_s3 + $0x80] sm:$0xff] %vm725_vm0, %v1217_v17  ;;  %v1187_v30 = vmul.f32 %v2423_v12, %v1154_v0  ;;  %v1090_v11 = vmul.f32 %v2419_v39, %v1057_v35  ;;  %v993_v28 = vmul.f32 %v2415_v61, %v960_v23  ;;  %v963_v57 = vld [vmem:[#allocation2 + $0x112] sm:$0xff]  ;;  %v801_v34 = vld [vmem:[#allocation2 + $0x128] sm:$0xff] }
  0xbd   :  { %v830_v49 = vmul.f32 %v2405_v53, %v797_v18  ;;  %v1121_v29 = vadd.f32 %v1089_v38, %v1023_v44  ;;  %v1024_v3 = vadd.f32 %v992_v24, %v926_v45  ;;  %v927_v36 = vadd.f32 %v895_v46, %v829_v40  ;;  %v1158_v43 = vld [vmem:[#allocation2 + $0x10c] sm:$0xff]  ;;  %v1159_v17 = vld [vmem:[#allocation2 + $0x114] sm:$0xff]  ;;  %v1062_v44 = vld [vmem:[#allocation2 + $0x123] sm:$0xff] }
  0xbe   :  { %v1218_v63 = vadd.f32 %v1186_v5, %v1120_v41  ;;  %v1188_v59 = vmul.f32 %v2423_v12, %v1155_v21  ;;  %v1091_v37 = vmul.f32 %v2419_v39, %v1058_v25  ;;  %v1189_v14 = vmul.f32 %v2423_v12, %v1156_v47  ;;  %v866_v5 = vld [vmem:[#allocation2 + $0x121] sm:$0xff]  ;;  %v867_v46 = vld [vmem:[#allocation2 + $0x129] sm:$0xff] }
  0xbf   :  { %v896_v60 = vmul.f32 %v2409_v58, %v863_v56  ;;  %v1219_v62 = vadd.f32 %v1187_v30, %v1121_v29  ;;  %v1122_v2 = vadd.f32 %v1090_v11, %v1024_v3  ;;  %v1025_v48 = vadd.f32 %v993_v28, %v927_v36  ;;  %v1160_v45 = vld [vmem:[#allocation2 + $0x124] sm:$0xff]  ;;  %v802_v11 = vld [vmem:[#allocation2 + $0x138] sm:$0xff] }
  0xc0   :  { %1250 = vst.msk [vmem:[%s2715_s3 + $0x88] sm:$0xff] %vm725_vm0, %v1218_v63  ;;  %v831_v6 = vmul.f32 %v2405_v53, %v798_v50  ;;  %v994_v13 = vmul.f32 %v2415_v61, %v961_v54  ;;  %v1092_v16 = vmul.f32 %v2419_v39, %v1059_v4  ;;  %v897_v51 = vmul.f32 %v2409_v58, %v864_v9  ;;  %v965_v29 = vld [vmem:[#allocation2 + $0x12a] sm:$0xff]  ;;  %v868_v36 = vld [vmem:[#allocation2 + $0x139] sm:$0xff] }
  0xc1   :  { %v928_v15 = vadd.f32 %v896_v60, %v830_v49  ;;  %1251 = vst.msk [vmem:[%s2715_s3 + $0x90] sm:$0xff] %vm725_vm0, %v1219_v62  ;;  %v1220_v22 = vadd.f32 %v1188_v59, %v1122_v2  ;;  %v1123_v55 = vadd.f32 %v1091_v37, %v1025_v48  ;;  %v1190_v26 = vmul.f32 %v2423_v12, %v1157_v10  ;;  %v1063_v3 = vld [vmem:[#allocation2 + $0x12b] sm:$0xff]  ;;  %v966_v2 = vld [vmem:[#allocation2 + $0x13a] sm:$0xff] }
  0xc2   :  { %v832_v27 = vmul.f32 %v2405_v53, %v799_v42  ;;  %v929_v31 = vadd.f32 %v897_v51, %v831_v6  ;;  %v995_v32 = vmul.f32 %v2415_v61, %v962_v7  ;;  %v898_v19 = vmul.f32 %v2409_v58, %v865_v8  ;;  %v1161_v37 = vld [vmem:[#allocation2 + $0x12c] sm:$0xff]  ;;  %v869_v48 = vld [vmem:[#allocation2 + $0x141] sm:$0xff] }
  0xc3   :  { %v1026_v0 = vadd.f32 %v994_v13, %v928_v15  ;;  %1252 = vst.msk [vmem:[%s2715_s3 + $0x98] sm:$0xff] %vm725_vm0, %v1220_v22  ;;  %v1221_v35 = vadd.f32 %v1189_v14, %v1123_v55  ;;  %v1093_v23 = vmul.f32 %v2419_v39, %v1060_v52  ;;  %v996_v18 = vmul.f32 %v2415_v61, %v963_v57  ;;  %v803_v14 = vld [vmem:[#allocation2 + $0x140] sm:$0xff]  ;;  %v804_v51 = vld [vmem:[#allocation2 + $0x150] sm:$0xff] }
  0xc4   :  { %v833_v38 = vmul.f32 %v2405_v53, %v800_v20  ;;  %v1027_v21 = vadd.f32 %v995_v32, %v929_v31  ;;  %v930_v40 = vadd.f32 %v898_v19, %v832_v27  ;;  %v899_v41 = vmul.f32 %v2409_v58, %v866_v5  ;;  %v1064_v13 = vld [vmem:[#allocation2 + $0x13b] sm:$0xff]  ;;  %v1065_v31 = vld [vmem:[#allocation2 + $0x143] sm:$0xff]  ;;  %v968_v32 = vld [vmem:[#allocation2 + $0x152] sm:$0xff] }
  0xc5   :  { %v1124_v24 = vadd.f32 %v1092_v16, %v1026_v0  ;;  %1253 = vst.msk [vmem:[%s2715_s3 + $0xa0] sm:$0xff] %vm725_vm0, %v1221_v35  ;;  %v1191_v25 = vmul.f32 %v2423_v12, %v1158_v43  ;;  %v1094_v47 = vmul.f32 %v2419_v39, %v1061_v1  ;;  %v997_v56 = vmul.f32 %v2415_v61, %v964_v33  ;;  %v967_v16 = vld [vmem:[#allocation2 + $0x142] sm:$0xff]  ;;  %v805_v19 = vld [vmem:[#allocation2 + $0x158] sm:$0xff] }
  0xc6   :  { %v834_v30 = vmul.f32 %v2405_v53, %v801_v34  ;;  %v1125_v49 = vadd.f32 %v1093_v23, %v1027_v21  ;;  %v1028_v50 = vadd.f32 %v996_v18, %v930_v40  ;;  %v931_v63 = vadd.f32 %v899_v41, %v833_v38  ;;  %v1162_v22 = vld [vmem:[#allocation2 + $0x13c] sm:$0xff]  ;;  %v1163_v38 = vld [vmem:[#allocation2 + $0x144] sm:$0xff]  ;;  %v1066_v21 = vld [vmem:[#allocation2 + $0x153] sm:$0xff] }
  0xc7   :  { %v1222_v28 = vadd.f32 %v1190_v26, %v1124_v24  ;;  %v1192_v54 = vmul.f32 %v2423_v12, %v1159_v17  ;;  %v1095_v4 = vmul.f32 %v2419_v39, %v1062_v44  ;;  %v1193_v9 = vmul.f32 %v2423_v12, %v1160_v45  ;;  %v870_v26 = vld [vmem:[#allocation2 + $0x151] sm:$0xff]  ;;  %v871_v40 = vld [vmem:[#allocation2 + $0x159] sm:$0xff] }
  0xc8   :  { %v900_v59 = vmul.f32 %v2409_v58, %v867_v46  ;;  %v1223_v60 = vadd.f32 %v1191_v25, %v1125_v49  ;;  %v1126_v10 = vadd.f32 %v1094_v47, %v1028_v50  ;;  %v1029_v42 = vadd.f32 %v997_v56, %v931_v63  ;;  %v806_v25 = vld [vmem:[#allocation2 + $0x168] sm:$0xff]  ;;  %v969_v49 = vld [vmem:[#allocation2 + $0x15a] sm:$0xff] }
  0xc9   :  { %1254 = vst.msk [vmem:[%s2715_s3 + $0xa8] sm:$0xff] %vm725_vm0, %v1222_v28  ;;  %v835_v62 = vmul.f32 %v2405_v53, %v802_v11  ;;  %v998_v7 = vmul.f32 %v2415_v61, %v965_v29  ;;  %v1096_v8 = vmul.f32 %v2419_v39, %v1063_v3  ;;  %v901_v15 = vmul.f32 %v2409_v58, %v868_v36  ;;  %v1164_v28 = vld [vmem:[#allocation2 + $0x154] sm:$0xff]  ;;  %v872_v50 = vld [vmem:[#allocation2 + $0x169] sm:$0xff] }
  0xca   :  { %v932_v6 = vadd.f32 %v900_v59, %v834_v30  ;;  %1255 = vst.msk [vmem:[%s2715_s3 + $0xb0] sm:$0xff] %vm725_vm0, %v1223_v60  ;;  %v1224_v52 = vadd.f32 %v1192_v54, %v1126_v10  ;;  %v1127_v57 = vadd.f32 %v1095_v4, %v1029_v42  ;;  %v1194_v20 = vmul.f32 %v2423_v12, %v1161_v37  ;;  %v1067_v36 = vld [vmem:[#allocation2 + $0x15b] sm:$0xff]  ;;  %v807_v54 = vld [vmem:[#allocation2 + $0x170] sm:$0xff] }
  0xcb   :  { %v836_v55 = vmul.f32 %v2405_v53, %v803_v14  ;;  %v933_v27 = vadd.f32 %v901_v15, %v835_v62  ;;  %v999_v5 = vmul.f32 %v2415_v61, %v966_v2  ;;  %v902_v0 = vmul.f32 %v2409_v58, %v869_v48  ;;  %v970_v14 = vld [vmem:[#allocation2 + $0x16a] sm:$0xff]  ;;  %v1165_v2 = vld [vmem:[#allocation2 + $0x15c] sm:$0xff] }
  0xcc   :  { %v1030_v43 = vadd.f32 %v998_v7, %v932_v6  ;;  %1256 = vst.msk [vmem:[%s2715_s3 + $0xb8] sm:$0xff] %vm725_vm0, %v1224_v52  ;;  %v1225_v1 = vadd.f32 %v1193_v9, %v1127_v57  ;;  %v1097_v33 = vmul.f32 %v2419_v39, %v1064_v13  ;;  %v1000_v34 = vmul.f32 %v2415_v61, %v967_v16  ;;  %v873_v60 = vld [vmem:[#allocation2 + $0x171] sm:$0xff] }
  0xcd   :  { %v837_v35 = vmul.f32 %v2405_v53, %v804_v51  ;;  %v1031_v18 = vadd.f32 %v999_v5, %v933_v27  ;;  %v934_v17 = vadd.f32 %v902_v0, %v836_v55  ;;  %v903_v24 = vmul.f32 %v2409_v58, %v870_v26  ;;  %v1068_v6 = vld [vmem:[#allocation2 + $0x16b] sm:$0xff]  ;;  %v1069_v27 = vld [vmem:[#allocation2 + $0x173] sm:$0xff] }
  0xce   :  { %v1128_v23 = vadd.f32 %v1096_v8, %v1030_v43  ;;  %1257 = vst.msk [vmem:[%s2715_s3 + $0xc0] sm:$0xff] %vm725_vm0, %v1225_v1  ;;  %v1195_v41 = vmul.f32 %v2423_v12, %v1162_v22  ;;  %v1098_v44 = vmul.f32 %v2419_v39, %v1065_v31  ;;  %v1001_v45 = vmul.f32 %v2415_v61, %v968_v32  ;;  %v971_v16 = vld [vmem:[#allocation2 + $0x172] sm:$0xff] }
  0xcf   :  { %v838_v46 = vmul.f32 %v2405_v53, %v805_v19  ;;  %v1129_v56 = vadd.f32 %v1097_v33, %v1031_v18  ;;  %v1032_v30 = vadd.f32 %v1000_v34, %v934_v17  ;;  %v935_v11 = vadd.f32 %v903_v24, %v837_v35  ;;  %v1167_v32 = vld [vmem:[#allocation2 + $0x174] sm:$0xff] }
  0xd0   :  { %v1226_v47 = vadd.f32 %v1194_v20, %v1128_v23  ;;  %v1196_v63 = vmul.f32 %v2423_v12, %v1163_v38  ;;  %v1099_v29 = vmul.f32 %v2419_v39, %v1066_v21  ;;  %v904_v3 = vmul.f32 %v2409_v58, %v871_v40  ;;  %v1166_v20 = vld [vmem:[#allocation2 + $0x16c] sm:$0xff] }
  0xd1   :  { %v1227_v4 = vadd.f32 %v1195_v41, %v1129_v56  ;;  %v1130_v9 = vadd.f32 %v1098_v44, %v1032_v30  ;;  %v1033_v59 = vadd.f32 %v1001_v45, %v935_v11  ;;  %v839_v37 = vmul.f32 %v2405_v53, %v806_v25 }
  0xd2   :  { %1258 = vst.msk [vmem:[%s2715_s3 + $0xc8] sm:$0xff] %vm725_vm0, %v1226_v47  ;;  %v1197_v10 = vmul.f32 %v2423_v12, %v1164_v28  ;;  %v936_v42 = vadd.f32 %v904_v3, %v838_v46  ;;  %v1002_v62 = vmul.f32 %v2415_v61, %v969_v49  ;;  %v905_v48 = vmul.f32 %v2409_v58, %v872_v50 }
  0xd3   :  { %1259 = vst.msk [vmem:[%s2715_s3 + $0xd0] sm:$0xff] %vm725_vm0, %v1227_v4  ;;  %v1228_v7 = vadd.f32 %v1196_v63, %v1130_v9  ;;  %v1131_v8 = vadd.f32 %v1099_v29, %v1033_v59  ;;  %v1100_v15 = vmul.f32 %v2419_v39, %v1067_v36  ;;  %v840_v13 = vmul.f32 %v2405_v53, %v807_v54 }
  0xd4   :  { %v1034_v51 = vadd.f32 %v1002_v62, %v936_v42  ;;  %v937_v52 = vadd.f32 %v905_v48, %v839_v37  ;;  %v1003_v57 = vmul.f32 %v2415_v61, %v970_v14  ;;  %v906_v22 = vmul.f32 %v2409_v58, %v873_v60 }
  0xd5   :  { %1260 = vst.msk [vmem:[%s2715_s3 + $0xd8] sm:$0xff] %vm725_vm0, %v1228_v7  ;;  %v1229_v55 = vadd.f32 %v1197_v10, %v1131_v8  ;;  %v1198_v26 = vmul.f32 %v2423_v12, %v1165_v2  ;;  %v1101_v43 = vmul.f32 %v2419_v39, %v1068_v6  ;;  %v1004_v31 = vmul.f32 %v2415_v61, %v971_v16 }
  0xd6   :  { %v1132_v53 = vadd.f32 %v1100_v15, %v1034_v51  ;;  %v1035_v5 = vadd.f32 %v1003_v57, %v937_v52  ;;  %v938_v0 = vadd.f32 %v906_v22, %v840_v13  ;;  %v1199_v58 = vmul.f32 %v2423_v12, %v1166_v20 }
  0xd7   :  { %1261 = vst.msk [vmem:[%s2715_s3 + $0xe0] sm:$0xff] %vm725_vm0, %v1229_v55  ;;  %v1102_v34 = vmul.f32 %v2419_v39, %v1069_v27  ;;  %v1200_v23 = vmul.f32 %v2423_v12, %v1167_v32 }
  0xd8   :  { %v1230_v19 = vadd.f32 %v1198_v26, %v1132_v53  ;;  %v1133_v1 = vadd.f32 %v1101_v43, %v1035_v5  ;;  %v1036_v33 = vadd.f32 %v1004_v31, %v938_v0 }
  0xda   :  { %1262 = vst.msk [vmem:[%s2715_s3 + $0xe8] sm:$0xff] %vm725_vm0, %v1230_v19  ;;  %v1231_v35 = vadd.f32 %v1199_v58, %v1133_v1  ;;  %v1134_v61 = vadd.f32 %v1102_v34, %v1036_v33 }
  0xdc   :  { %1263 = vst.msk [vmem:[%s2715_s3 + $0xf0] sm:$0xff] %vm725_vm0, %v1231_v35  ;;  %v1232_v18 = vadd.f32 %v1200_v23, %v1134_v61 }
  0xde   :  { %1264 = vst.msk [vmem:[%s2715_s3 + $0xf8] sm:$0xff] %vm725_vm0, %v1232_v18 }
  0xdf   :  { %1269 = vsyncpa [#allocation4], 1 }
  0xe0   :  { %1270 = vsyncpa [#allocation6], 1 }

</bundles_post_ra>
